<compile_context>
chip_gen: v7x
topology: tpu7x:2x2x1
jax: 0.10.0
libtpu: 0.0.40
codegen_flags: <defaults>
</compile_context>

<pallas_src>
import functools
import math

import numpy as np
import jax
import jax.numpy as jnp
from jax.experimental import pallas as pl
from jax.experimental.pallas import tpu as pltpu


# ---------------------------------------------------------------------------
# Fused whole-model kernel (grid = batch blocks; layers looped in-kernel)
# ---------------------------------------------------------------------------
def _fused_kernel(n_head, b_blk, eps,
                  x_ref, mb_ref, pe_ref, emb_w_ref, gvec_ref, lvec_ref,
                  wqkv_ref, wo_ref, wfc1_ref, wfc2_ref, pw1_ref, pw2_ref,
                  logits_ref):
    H = n_head
    Tp, E = pe_ref.shape
    Dh = E // H
    M = b_blk * Tp
    L = wqkv_ref.shape[0]
    out_pad = logits_ref.shape[-1]
    scale = 1.0 / math.sqrt(Dh)
    bf16 = jnp.bfloat16

    def layer_norm(z, g, b):
        mu = jnp.mean(z, axis=-1, keepdims=True)
        c = z - mu
        var = jnp.mean(c * c, axis=-1, keepdims=True)
        return c * jax.lax.rsqrt(var + eps) * g + b

    # packed global vectors: rows [emb_b, lnf_g, lnf_b, pb1, pb2, 0, 0, 0]
    gv = gvec_ref[...]
    emb_b = gv[0:1, :E]
    lnf_g = gv[1:2, :E]
    lnf_b = gv[2:3, :E]
    pb1 = gv[3:4, :E]
    pb2 = gv[4:5, :out_pad]

    # ---- embedding + frozen sine PE (B_blk*Tp rows folded into the M dim) ----
    if b_blk == 1:
        x = x_ref[0]                                        # (Tp, Din)
    else:
        x = x_ref[...].reshape(M, x_ref.shape[-1])          # Tp is 8-aligned
    h = jnp.dot(x.astype(bf16), emb_w_ref[...], preferred_element_type=jnp.float32)
    pe = pe_ref[...]
    pe_full = pe if b_blk == 1 else jnp.tile(pe, (b_blk, 1))
    h = h + emb_b + pe_full                                  # (M, E) f32 residual

    # ---- all encoder layers in-kernel; weight stacks are VMEM-resident ----
    def layer(l, h):
        lv = lvec_ref[l]                                     # (8, 4E) packed vectors
        ln1_g, ln1_b = lv[0:1, :E], lv[1:2, :E]
        ln2_g, ln2_b = lv[2:3, :E], lv[3:4, :E]
        bqkv = lv[4:5, :3 * E]
        bo = lv[5:6, :E]
        bfc1 = lv[6:7, :]
        bfc2 = lv[7:8, :E]

        # --- masked multi-head self-attention (pre-LN) ---
        a_in = layer_norm(h, ln1_g, ln1_b).astype(bf16)
        qkv = jnp.dot(a_in, wqkv_ref[l], preferred_element_type=jnp.float32) + bqkv
        qkv_bf = qkv.astype(bf16)                            # one cast per tile

        attn_rows = []
        for b in range(b_blk):                               # static; b_blk is small
            r = slice(b * Tp, (b + 1) * Tp)
            bias = mb_ref[b]                                 # (1, Tp) key-pad bias
            o_heads = []
            # TODO(synk): for production Dh (>=64) replace the per-head loop with a
            #             head-batched dot_general (single MXU push for all heads).
            for hd in range(H):
                q = qkv_bf[r, hd * Dh:(hd + 1) * Dh]
                k = qkv_bf[r, E + hd * Dh:E + (hd + 1) * Dh]
                v = qkv_bf[r, 2 * E + hd * Dh:2 * E + (hd + 1) * Dh]
                s = jnp.dot(q, k.T, preferred_element_type=jnp.float32) * scale + bias
                s = s - jnp.max(s, axis=-1, keepdims=True)
                p = jnp.exp(s)
                p = p * pl.reciprocal(jnp.sum(p, axis=-1, keepdims=True), approx=True)
                o_heads.append(jnp.dot(p.astype(bf16), v,
                                       preferred_element_type=jnp.float32))
            attn_rows.append(jnp.concatenate(o_heads, axis=-1))      # (Tp, E)
        attn = attn_rows[0] if b_blk == 1 else jnp.concatenate(attn_rows, axis=0)
        # merged head output projection: ONE (M,E)@(E,E) dot
        h = h + jnp.dot(attn.astype(bf16), wo_ref[l],
                        preferred_element_type=jnp.float32) + bo

        # --- MLP (pre-LN) ---
        m_in = layer_norm(h, ln2_g, ln2_b).astype(bf16)
        m = jax.nn.gelu(jnp.dot(m_in, wfc1_ref[l],
                                preferred_element_type=jnp.float32) + bfc1)
        h = h + jnp.dot(m.astype(bf16), wfc2_ref[l],
                        preferred_element_type=jnp.float32) + bfc2
        return h

    h = jax.lax.fori_loop(0, L, layer, h, unroll=True)

    # ---- final LN + classification head on the CLS row of every batch element ----
    cls_rows = [h[b * Tp:b * Tp + 1, :] for b in range(b_blk)]
    cls = cls_rows[0] if b_blk == 1 else jnp.concatenate(cls_rows, axis=0)
    cls = layer_norm(cls, lnf_g, lnf_b)
    hid = jnp.maximum(jnp.dot(cls.astype(bf16), pw1_ref[...],
                              preferred_element_type=jnp.float32) + pb1, 0.0)
    out = jnp.dot(hid.astype(bf16), pw2_ref[...],
                  preferred_element_type=jnp.float32) + pb2          # (b_blk, out_pad)
    for b in range(b_blk):
        logits_ref[b] = out[b:b + 1].astype(logits_ref.dtype)


def _fused_forward(x_p, mask_bias, pe, params, n_head, b_blk, eps=1e-5):
    B_pad, Tp_pad, Din = x_p.shape
    E = pe.shape[1]
    L = params["wqkv"].shape[0]
    out_pad = params["pw2"].shape[1]
    W = params["gvec"].shape[1]
    assert B_pad % b_blk == 0
    nb = B_pad // b_blk        # keep nb >= 2 so both v7x TensorCores get work

    batch3 = lambda b: (b, 0, 0)
    const2 = lambda b: (0, 0)
    const3 = lambda b: (0, 0, 0)

    args = (x_p, mask_bias, pe,
            params["emb_w"], params["gvec"], params["lvec"],
            params["wqkv"], params["wo"], params["wfc1"], params["wfc2"],
            params["pw1"], params["pw2"])

    in_specs = [
        pl.BlockSpec((b_blk, Tp_pad, Din), batch3),   # x (CLS prepended, seq padded)
        pl.BlockSpec((b_blk, 1, Tp_pad), batch3),     # additive key-padding bias
        pl.BlockSpec((Tp_pad, E), const2),            # sine PE table
        pl.BlockSpec((Din, E), const2),               # emb_w (bf16)
        pl.BlockSpec((8, W), const2),                 # packed global vectors (f32)
        pl.BlockSpec((L, 8, 4 * E), const3),          # packed per-layer vectors (f32)
        pl.BlockSpec((L, E, 3 * E), const3),          # wqkv (bf16)
        pl.BlockSpec((L, E, E), const3),              # wo (bf16)
        pl.BlockSpec((L, E, 4 * E), const3),          # wfc1 (bf16)
        pl.BlockSpec((L, 4 * E, E), const3),          # wfc2 (bf16)
        pl.BlockSpec((E, E), const2),                 # proj_w1 (bf16)
        pl.BlockSpec((E, out_pad), const2),           # proj_w2 (bf16, lane-dense pad)
    ]
    out_spec = pl.BlockSpec((b_blk, 1, out_pad), batch3)

    # cost estimate: weights are read exactly once, activations once per batch.
    flops = int(B_pad * (2 * Tp_pad * Din * E
                         + L * Tp_pad * E * (24 * E + 4 * Tp_pad)
                         + 2 * E * E + 2 * E * out_pad))
    transc = int(B_pad * L * (n_head * Tp_pad * Tp_pad + 8 * Tp_pad * E))
    bytes_acc = int(sum(a.size * a.dtype.itemsize for a in args)
                    + B_pad * out_pad * 4)

    # Explicit VMEM budget: resident constants + double-buffered per-step blocks
    # + headroom, clamped to the v7x 64 MiB ceiling.
    resident = int(sum(a.size * a.dtype.itemsize for a in args[2:]))
    per_step = (b_blk * Tp_pad * (Din + 1) + b_blk * out_pad) * 4
    vmem_limit = int(min(64 << 20,
                         max(2 * (resident + 2 * per_step) + (8 << 20), 24 << 20)))

    return pl.pallas_call(
        functools.partial(_fused_kernel, n_head, b_blk, eps),
        out_shape=jax.ShapeDtypeStruct((B_pad, 1, out_pad), jnp.float32),
        grid_spec=pltpu.PrefetchScalarGridSpec(
            num_scalar_prefetch=0,
            grid=(nb,),
            in_specs=in_specs,
            out_specs=out_spec),
        compiler_params=pltpu.CompilerParams(
            dimension_semantics=("parallel",),
            vmem_limit_bytes=vmem_limit),
        cost_estimate=pl.CostEstimate(flops=flops, transcendentals=transc,
                                      bytes_accessed=bytes_acc),
    )(*args)


# ---------------------------------------------------------------------------
# Parameters + forward wrapper
# ---------------------------------------------------------------------------
def sine_pos_encoding(max_len, E):
    pos = np.arange(max_len, dtype=np.float64)[:, None]
    i = np.arange(E, dtype=np.float64)[None, :]
    angle = pos / np.power(10000.0, (2.0 * (i // 2)) / E)
    pe = np.where(i % 2 == 0, np.sin(angle), np.cos(angle))
    return jnp.asarray(pe, dtype=jnp.float32)


def init_params(key, in_dim, n_embd, n_head, n_layer, output_size, block_size=64):
    E, L = n_embd, n_layer
    assert E % n_head == 0
    out_pad = ((output_size + 127) // 128) * 128   # lane-dense logits slab
    W = max(E, out_pad)
    ks = jax.random.split(key, 20)

    def w(k, shape, fan_in):                       # bf16 matmul weights
        return (jax.random.normal(k, shape, jnp.float32) / math.sqrt(fan_in)
                ).astype(jnp.bfloat16)

    def v(k, shape, s=0.02):                       # f32 small vectors
        return s * jax.random.normal(k, shape, jnp.float32)

    # packed global vectors: rows [emb_b, lnf_g, lnf_b, pb1, pb2, 0, 0, 0]
    gvec = jnp.zeros((8, W), jnp.float32)
    gvec = gvec.at[0, :E].set(v(ks[0], (E,)))
    gvec = gvec.at[1, :E].set(1.0 + v(ks[1], (E,)))
    gvec = gvec.at[2, :E].set(v(ks[2], (E,)))
    gvec = gvec.at[3, :E].set(v(ks[3], (E,)))
    gvec = gvec.at[4, :output_size].set(v(ks[4], (output_size,)))

    # packed per-layer vectors: rows [ln1_g, ln1_b, ln2_g, ln2_b, bqkv, bo, bfc1, bfc2]
    lvec = jnp.zeros((L, 8, 4 * E), jnp.float32)
    lvec = lvec.at[:, 0, :E].set(1.0 + v(ks[5], (L, E)))
    lvec = lvec.at[:, 1, :E].set(v(ks[6], (L, E)))
    lvec = lvec.at[:, 2, :E].set(1.0 + v(ks[7], (L, E)))
    lvec = lvec.at[:, 3, :E].set(v(ks[8], (L, E)))
    lvec = lvec.at[:, 4, :3 * E].set(v(ks[9], (L, 3 * E)))
    lvec = lvec.at[:, 5, :E].set(v(ks[10], (L, E)))
    lvec = lvec.at[:, 6, :4 * E].set(v(ks[11], (L, 4 * E)))
    lvec = lvec.at[:, 7, :E].set(v(ks[12], (L, E)))

    pw2 = jnp.zeros((E, out_pad), jnp.float32).at[:, :output_size].set(
        jax.random.normal(ks[13], (E, output_size), jnp.float32) / math.sqrt(E)
    ).astype(jnp.bfloat16)

    return {
        "emb_w": w(ks[14], (in_dim, E), in_dim),
        "gvec": gvec,
        "lvec": lvec,
        "wqkv": w(ks[15], (L, E, 3 * E), E),
        "wo": w(ks[16], (L, E, E), E),
        "wfc1": w(ks[17], (L, E, 4 * E), E),
        "wfc2": w(ks[18], (L, 4 * E, E), 4 * E),
        "pw1": w(ks[19], (E, E), E),
        "pw2": pw2,
        "pe": sine_pos_encoding(block_size, E),
    }


def transformer_discriminator_forward(params, x, valid, *, n_head, output_size,
                                      b_blk=1):
    # For large B, raise b_blk (8-16) but keep (padded B)/b_blk >= 2 for v7x.
    B, T, Din = x.shape
    Tp = T + 1
    Tp_pad = ((Tp + 7) // 8) * 8                    # 8-aligned; pad rows masked out
    E = params["pe"].shape[1]
    assert params["pe"].shape[0] >= Tp_pad

    # prepend all-ones CLS-like token to x and valid (matches torch.cat)
    x_p = jnp.concatenate([jnp.ones((B, 1, Din), x.dtype), x], axis=1)
    valid_p = jnp.concatenate([jnp.ones((B, 1), valid.dtype), valid], axis=1)

    # pad sequence to Tp_pad (pad tokens get valid=0 -> masked as keys)
    x_p = jnp.pad(x_p, ((0, 0), (0, Tp_pad - Tp), (0, 0)))
    valid_p = jnp.pad(valid_p, ((0, 0), (0, Tp_pad - Tp)))

    # pad batch to a multiple of b_blk (pad rows are discarded at the end)
    B_pad = ((B + b_blk - 1) // b_blk) * b_blk
    if B_pad != B:
        x_p = jnp.pad(x_p, ((0, B_pad - B), (0, 0), (0, 0)))
        valid_p = jnp.pad(valid_p, ((0, B_pad - B), (0, 0)))

    # additive key-padding bias: 0 for valid, -1e9 for padded keys (bf16-safe)
    mask_bias = ((valid_p.astype(jnp.float32) - 1.0) * 1e9)[:, None, :]  # (B_pad,1,Tp_pad)
    pe = params["pe"][:Tp_pad]

    logits = _fused_forward(x_p, mask_bias, pe, params, n_head, b_blk)
    return logits[:B, 0, :output_size]


# ---------------------------------------------------------------------------
# Pure-JAX reference (f32 math, same bf16-stored weights upcast to f32)
# ---------------------------------------------------------------------------
def reference_forward(params, x, valid, *, n_head, output_size, eps=1e-5):
    B, T, Din = x.shape
    E = params["pe"].shape[1]
    H = n_head
    Dh = E // H
    L = params["wqkv"].shape[0]
    out_pad = params["pw2"].shape[1]
    f32 = lambda a: a.astype(jnp.float32)

    x = jnp.concatenate([jnp.ones((B, 1, Din), x.dtype), x], axis=1)
    valid = jnp.concatenate([jnp.ones((B, 1), valid.dtype), valid], axis=1)
    Tp = T + 1

    gv = params["gvec"]
    emb_b, lnf_g, lnf_b, pb1 = gv[0, :E], gv[1, :E], gv[2, :E], gv[3, :E]
    pb2 = gv[4, :out_pad]
    lv = params["lvec"]

    def ln(z, g, b):
        mu = z.mean(-1, keepdims=True)
        var = ((z - mu) ** 2).mean(-1, keepdims=True)
        return (z - mu) * jax.lax.rsqrt(var + eps) * g + b

    h = x @ f32(params["emb_w"]) + emb_b + params["pe"][:Tp][None]
    bias = ((valid.astype(jnp.float32) - 1.0) * 1e9)[:, None, None, :]
    scale = 1.0 / math.sqrt(Dh)

    for l in range(L):
        ln1_g, ln1_b = lv[l, 0, :E], lv[l, 1, :E]
        ln2_g, ln2_b = lv[l, 2, :E], lv[l, 3, :E]
        bqkv, bo = lv[l, 4, :3 * E], lv[l, 5, :E]
        bfc1, bfc2 = lv[l, 6, :4 * E], lv[l, 7, :E]

        a_in = ln(h, ln1_g, ln1_b)
        qkv = a_in @ f32(params["wqkv"][l]) + bqkv
        q, k, v = jnp.split(qkv, 3, axis=-1)
        q = q.reshape(B, Tp, H, Dh).transpose(0, 2, 1, 3)
        k = k.reshape(B, Tp, H, Dh).transpose(0, 2, 1, 3)
        v = v.reshape(B, Tp, H, Dh).transpose(0, 2, 1, 3)
        s = jnp.einsum("bhqd,bhkd->bhqk", q, k) * scale + bias
        p = jax.nn.softmax(s, axis=-1)
        o = jnp.einsum("bhqk,bhkd->bhqd", p, v).transpose(0, 2, 1, 3).reshape(B, Tp, E)
        h = h + o @ f32(params["wo"][l]) + bo

        m_in = ln(h, ln2_g, ln2_b)
        m = jax.nn.gelu(m_in @ f32(params["wfc1"][l]) + bfc1)
        h = h + m @ f32(params["wfc2"][l]) + bfc2

    cls = ln(h[:, 0, :], lnf_g, lnf_b)
    hid = jnp.maximum(cls @ f32(params["pw1"]) + pb1, 0.0)
    logits = hid @ f32(params["pw2"]) + pb2
    return logits[:, :output_size]


if __name__ == "__main__":
    B, T, IN_DIM = 2, 8, 16
    N_EMBD, N_HEAD, N_LAYER, OUT = 32, 4, 2, 12

    key = jax.random.PRNGKey(0)
    k_params, k_x, k_v = jax.random.split(key, 3)

    params = init_params(k_params, IN_DIM, N_EMBD, N_HEAD, N_LAYER, OUT, block_size=64)
    x = jax.random.normal(k_x, (B, T, IN_DIM), jnp.float32)
    # mix of valid / padded tokens to exercise the key-padding mask
    valid = (jax.random.uniform(k_v, (B, T)) > 0.25).astype(jnp.float32)

    fwd = jax.jit(functools.partial(transformer_discriminator_forward,
                                    n_head=N_HEAD, output_size=OUT))
    logits = fwd(params, x, valid)
    jax.block_until_ready(logits)

    ref = reference_forward(params, x, valid, n_head=N_HEAD, output_size=OUT)

    assert logits.shape == (B, OUT), logits.shape
    assert bool(jnp.all(jnp.isfinite(logits)))
    err = float(jnp.max(jnp.abs(logits - ref)))
    # kernel feeds bf16 operands to the MXU (f32 accumulate) -> small, bounded
    # deviation from the pure-f32 reference.
    assert err < 5e-2, err
    print("KERNEL_OK")
</pallas_src>

<mosaic_0001>
module attributes {stable_mosaic.version = 11 : i64} {
  func.func @_fused_kernel(%arg0: i32, %arg1: memref<1x16x16xf32, #tpu.memory_space<vmem>>, %arg2: memref<1x1x16xf32, #tpu.memory_space<vmem>>, %arg3: memref<16x32xf32, #tpu.memory_space<vmem>>, %arg4: memref<16x32xbf16, #tpu.memory_space<vmem>>, %arg5: memref<8x128xf32, #tpu.memory_space<vmem>>, %arg6: memref<2x8x128xf32, #tpu.memory_space<vmem>>, %arg7: memref<2x32x96xbf16, #tpu.memory_space<vmem>>, %arg8: memref<2x32x32xbf16, #tpu.memory_space<vmem>>, %arg9: memref<2x32x128xbf16, #tpu.memory_space<vmem>>, %arg10: memref<2x128x32xbf16, #tpu.memory_space<vmem>>, %arg11: memref<32x32xbf16, #tpu.memory_space<vmem>>, %arg12: memref<32x128xbf16, #tpu.memory_space<vmem>>, %arg13: memref<1x1x128xf32, #tpu.memory_space<vmem>>) attributes {dimension_semantics = [#tpu.dimension_semantics<parallel>], iteration_bounds = array<i64: 2>, scalar_prefetch = 0 : i64, scratch_operands = 0 : i64, tpu.core_type = #tpu.core_type<tc>, window_params = [{transform_indices = @transform_0, window_bounds = array<i64: 1, 16, 16>}, {transform_indices = @transform_1, window_bounds = array<i64: 1, 1, 16>}, {pipeline_mode = #tpu.pipeline_mode<synchronous>, transform_indices = @transform_2, window_bounds = array<i64: 16, 32>}, {pipeline_mode = #tpu.pipeline_mode<synchronous>, transform_indices = @transform_3, window_bounds = array<i64: 16, 32>}, {pipeline_mode = #tpu.pipeline_mode<synchronous>, transform_indices = @transform_4, window_bounds = array<i64: 8, 128>}, {pipeline_mode = #tpu.pipeline_mode<synchronous>, transform_indices = @transform_5, window_bounds = array<i64: 2, 8, 128>}, {pipeline_mode = #tpu.pipeline_mode<synchronous>, transform_indices = @transform_6, window_bounds = array<i64: 2, 32, 96>}, {pipeline_mode = #tpu.pipeline_mode<synchronous>, transform_indices = @transform_7, window_bounds = array<i64: 2, 32, 32>}, {pipeline_mode = #tpu.pipeline_mode<synchronous>, transform_indices = @transform_8, window_bounds = array<i64: 2, 32, 128>}, {pipeline_mode = #tpu.pipeline_mode<synchronous>, transform_indices = @transform_9, window_bounds = array<i64: 2, 128, 32>}, {pipeline_mode = #tpu.pipeline_mode<synchronous>, transform_indices = @transform_10, window_bounds = array<i64: 32, 32>}, {pipeline_mode = #tpu.pipeline_mode<synchronous>, transform_indices = @transform_11, window_bounds = array<i64: 32, 128>}, {transform_indices = @transform_12, window_bounds = array<i64: 1, 1, 128>}]} {
    %c0 = arith.constant 0 : index
    %c0_0 = arith.constant 0 : index
    %0 = vector.load %arg5[%c0, %c0_0] : memref<8x128xf32, #tpu.memory_space<vmem>>, vector<8x128xf32>
    %1 = vector.extract_strided_slice %0 {offsets = [0, 0], sizes = [1, 32], strides = [1, 1]} : vector<8x128xf32> to vector<1x32xf32>
    %2 = vector.extract_strided_slice %0 {offsets = [1, 0], sizes = [1, 32], strides = [1, 1]} : vector<8x128xf32> to vector<1x32xf32>
    %3 = vector.extract_strided_slice %0 {offsets = [2, 0], sizes = [1, 32], strides = [1, 1]} : vector<8x128xf32> to vector<1x32xf32>
    %4 = vector.extract_strided_slice %0 {offsets = [3, 0], sizes = [1, 32], strides = [1, 1]} : vector<8x128xf32> to vector<1x32xf32>
    %5 = vector.extract_strided_slice %0 {offsets = [4, 0], sizes = [1, 128], strides = [1, 1]} : vector<8x128xf32> to vector<1x128xf32>
    %c0_1 = arith.constant 0 : index
    %c0_2 = arith.constant 0 : index
    %c0_3 = arith.constant 0 : index
    %6 = vector.load %arg1[%c0_1, %c0_2, %c0_3] : memref<1x16x16xf32, #tpu.memory_space<vmem>>, vector<1x16x16xf32>
    %7 = vector.shape_cast %6 : vector<1x16x16xf32> to vector<16x16xf32>
    %8 = arith.truncf %7 : vector<16x16xf32> to vector<16x16xbf16>
    %c0_4 = arith.constant 0 : index
    %c0_5 = arith.constant 0 : index
    %9 = vector.load %arg4[%c0_4, %c0_5] : memref<16x32xbf16, #tpu.memory_space<vmem>>, vector<16x32xbf16>
    %cst = arith.constant dense<0.000000e+00> : vector<16x32xf32>
    %10 = tpu.matmul %8, %9, %cst {dimension_numbers = #tpu.dot_dimension_numbers<[1], [0], [0], [1], [0, 0, 1, 1], [], []>} : vector<16x16xbf16>, vector<16x32xbf16>, vector<16x32xf32> -> vector<16x32xf32>
    %c0_6 = arith.constant 0 : index
    %c0_7 = arith.constant 0 : index
    %11 = vector.load %arg3[%c0_6, %c0_7] : memref<16x32xf32, #tpu.memory_space<vmem>>, vector<16x32xf32>
    %12 = vector.broadcast %1 : vector<1x32xf32> to vector<16x32xf32>
    %13 = arith.addf %10, %12 : vector<16x32xf32>
    %14 = arith.addf %13, %11 : vector<16x32xf32>
    %c0_i32 = arith.constant 0 : i32
    %15 = arith.index_cast %c0_i32 : i32 to index
    %c0_8 = arith.constant 0 : index
    %c0_9 = arith.constant 0 : index
    %16 = vector.load %arg6[%15, %c0_8, %c0_9] : memref<2x8x128xf32, #tpu.memory_space<vmem>>, vector<1x8x128xf32>
    %17 = vector.shape_cast %16 : vector<1x8x128xf32> to vector<8x128xf32>
    %18 = vector.extract_strided_slice %17 {offsets = [0, 0], sizes = [1, 32], strides = [1, 1]} : vector<8x128xf32> to vector<1x32xf32>
    %19 = vector.extract_strided_slice %17 {offsets = [1, 0], sizes = [1, 32], strides = [1, 1]} : vector<8x128xf32> to vector<1x32xf32>
    %20 = vector.extract_strided_slice %17 {offsets = [2, 0], sizes = [1, 32], strides = [1, 1]} : vector<8x128xf32> to vector<1x32xf32>
    %21 = vector.extract_strided_slice %17 {offsets = [3, 0], sizes = [1, 32], strides = [1, 1]} : vector<8x128xf32> to vector<1x32xf32>
    %22 = vector.extract_strided_slice %17 {offsets = [4, 0], sizes = [1, 96], strides = [1, 1]} : vector<8x128xf32> to vector<1x96xf32>
    %23 = vector.extract_strided_slice %17 {offsets = [5, 0], sizes = [1, 32], strides = [1, 1]} : vector<8x128xf32> to vector<1x32xf32>
    %24 = vector.extract_strided_slice %17 {offsets = [6, 0], sizes = [1, 128], strides = [1, 1]} : vector<8x128xf32> to vector<1x128xf32>
    %25 = vector.extract_strided_slice %17 {offsets = [7, 0], sizes = [1, 32], strides = [1, 1]} : vector<8x128xf32> to vector<1x32xf32>
    %cst_10 = arith.constant dense<0.000000e+00> : vector<16xf32>
    %26 = vector.multi_reduction <add>, %14, %cst_10 [1] : vector<16x32xf32> to vector<16xf32>
    %27 = vector.shape_cast %26 : vector<16xf32> to vector<16x1xf32>
    %cst_11 = arith.constant 3.200000e+01 : f32
    %28 = vector.broadcast %cst_11 : f32 to vector<16x1xf32>
    %29 = arith.divf %27, %28 : vector<16x1xf32>
    %30 = vector.broadcast %29 : vector<16x1xf32> to vector<16x32xf32>
    %31 = arith.subf %14, %30 : vector<16x32xf32>
    %32 = arith.mulf %31, %31 : vector<16x32xf32>
    %cst_12 = arith.constant dense<0.000000e+00> : vector<16xf32>
    %33 = vector.multi_reduction <add>, %32, %cst_12 [1] : vector<16x32xf32> to vector<16xf32>
    %34 = vector.shape_cast %33 : vector<16xf32> to vector<16x1xf32>
    %cst_13 = arith.constant 3.200000e+01 : f32
    %35 = vector.broadcast %cst_13 : f32 to vector<16x1xf32>
    %36 = arith.divf %34, %35 : vector<16x1xf32>
    %cst_14 = arith.constant 9.99999974E-6 : f32
    %37 = vector.broadcast %cst_14 : f32 to vector<16x1xf32>
    %38 = arith.addf %36, %37 : vector<16x1xf32>
    %39 = math.rsqrt %38 : vector<16x1xf32>
    %40 = vector.broadcast %39 : vector<16x1xf32> to vector<16x32xf32>
    %41 = arith.mulf %31, %40 : vector<16x32xf32>
    %42 = vector.broadcast %18 : vector<1x32xf32> to vector<16x32xf32>
    %43 = arith.mulf %41, %42 : vector<16x32xf32>
    %44 = vector.broadcast %19 : vector<1x32xf32> to vector<16x32xf32>
    %45 = arith.addf %43, %44 : vector<16x32xf32>
    %46 = arith.truncf %45 : vector<16x32xf32> to vector<16x32xbf16>
    %47 = arith.index_cast %c0_i32 : i32 to index
    %c0_15 = arith.constant 0 : index
    %c0_16 = arith.constant 0 : index
    %48 = vector.load %arg7[%47, %c0_15, %c0_16] : memref<2x32x96xbf16, #tpu.memory_space<vmem>>, vector<1x32x96xbf16>
    %49 = vector.shape_cast %48 : vector<1x32x96xbf16> to vector<32x96xbf16>
    %cst_17 = arith.constant dense<0.000000e+00> : vector<16x96xf32>
    %50 = tpu.matmul %46, %49, %cst_17 {dimension_numbers = #tpu.dot_dimension_numbers<[1], [0], [0], [1], [0, 0, 1, 1], [], []>} : vector<16x32xbf16>, vector<32x96xbf16>, vector<16x96xf32> -> vector<16x96xf32>
    %51 = vector.broadcast %22 : vector<1x96xf32> to vector<16x96xf32>
    %52 = arith.addf %50, %51 : vector<16x96xf32>
    %53 = arith.truncf %52 : vector<16x96xf32> to vector<16x96xbf16>
    %c0_18 = arith.constant 0 : index
    %c0_19 = arith.constant 0 : index
    %c0_20 = arith.constant 0 : index
    %54 = vector.load %arg2[%c0_18, %c0_19, %c0_20] : memref<1x1x16xf32, #tpu.memory_space<vmem>>, vector<1x1x16xf32>
    %55 = vector.shape_cast %54 : vector<1x1x16xf32> to vector<1x16xf32>
    %56 = vector.extract_strided_slice %53 {offsets = [0, 0], sizes = [16, 8], strides = [1, 1]} : vector<16x96xbf16> to vector<16x8xbf16>
    %57 = vector.extract_strided_slice %53 {offsets = [0, 32], sizes = [16, 8], strides = [1, 1]} : vector<16x96xbf16> to vector<16x8xbf16>
    %58 = vector.extract_strided_slice %53 {offsets = [0, 64], sizes = [16, 8], strides = [1, 1]} : vector<16x96xbf16> to vector<16x8xbf16>
    %59 = tpu.transpose %57, [1, 0] : vector<16x8xbf16> -> vector<8x16xbf16>
    %cst_21 = arith.constant dense<0.000000e+00> : vector<16x16xf32>
    %60 = tpu.matmul %56, %59, %cst_21 {dimension_numbers = #tpu.dot_dimension_numbers<[1], [0], [0], [1], [0, 0, 1, 1], [], []>} : vector<16x8xbf16>, vector<8x16xbf16>, vector<16x16xf32> -> vector<16x16xf32>
    %cst_22 = arith.constant 0.353553385 : f32
    %61 = vector.broadcast %cst_22 : f32 to vector<16x16xf32>
    %62 = arith.mulf %60, %61 : vector<16x16xf32>
    %63 = vector.broadcast %55 : vector<1x16xf32> to vector<16x16xf32>
    %64 = arith.addf %62, %63 : vector<16x16xf32>
    %cst_23 = arith.constant dense<0xFF800000> : vector<16xf32>
    %65 = vector.multi_reduction <maximumf>, %64, %cst_23 [1] : vector<16x16xf32> to vector<16xf32>
    %66 = vector.shape_cast %65 : vector<16xf32> to vector<16x1xf32>
    %67 = vector.broadcast %66 : vector<16x1xf32> to vector<16x16xf32>
    %68 = arith.subf %64, %67 : vector<16x16xf32>
    %69 = math.exp %68 : vector<16x16xf32>
    %cst_24 = arith.constant dense<0.000000e+00> : vector<16xf32>
    %70 = vector.multi_reduction <add>, %69, %cst_24 [1] : vector<16x16xf32> to vector<16xf32>
    %71 = vector.shape_cast %70 : vector<16xf32> to vector<16x1xf32>
    %72 = tpu.reciprocal %71 {approx = true} : vector<16x1xf32> -> vector<16x1xf32>
    %73 = vector.broadcast %72 : vector<16x1xf32> to vector<16x16xf32>
    %74 = arith.mulf %69, %73 : vector<16x16xf32>
    %75 = arith.truncf %74 : vector<16x16xf32> to vector<16x16xbf16>
    %cst_25 = arith.constant dense<0.000000e+00> : vector<16x8xf32>
    %76 = tpu.matmul %75, %58, %cst_25 {dimension_numbers = #tpu.dot_dimension_numbers<[1], [0], [0], [1], [0, 0, 1, 1], [], []>} : vector<16x16xbf16>, vector<16x8xbf16>, vector<16x8xf32> -> vector<16x8xf32>
    %77 = vector.extract_strided_slice %53 {offsets = [0, 8], sizes = [16, 8], strides = [1, 1]} : vector<16x96xbf16> to vector<16x8xbf16>
    %78 = vector.extract_strided_slice %53 {offsets = [0, 40], sizes = [16, 8], strides = [1, 1]} : vector<16x96xbf16> to vector<16x8xbf16>
    %79 = vector.extract_strided_slice %53 {offsets = [0, 72], sizes = [16, 8], strides = [1, 1]} : vector<16x96xbf16> to vector<16x8xbf16>
    %80 = tpu.transpose %78, [1, 0] : vector<16x8xbf16> -> vector<8x16xbf16>
    %cst_26 = arith.constant dense<0.000000e+00> : vector<16x16xf32>
    %81 = tpu.matmul %77, %80, %cst_26 {dimension_numbers = #tpu.dot_dimension_numbers<[1], [0], [0], [1], [0, 0, 1, 1], [], []>} : vector<16x8xbf16>, vector<8x16xbf16>, vector<16x16xf32> -> vector<16x16xf32>
    %cst_27 = arith.constant 0.353553385 : f32
    %82 = vector.broadcast %cst_27 : f32 to vector<16x16xf32>
    %83 = arith.mulf %81, %82 : vector<16x16xf32>
    %84 = vector.broadcast %55 : vector<1x16xf32> to vector<16x16xf32>
    %85 = arith.addf %83, %84 : vector<16x16xf32>
    %cst_28 = arith.constant dense<0xFF800000> : vector<16xf32>
    %86 = vector.multi_reduction <maximumf>, %85, %cst_28 [1] : vector<16x16xf32> to vector<16xf32>
    %87 = vector.shape_cast %86 : vector<16xf32> to vector<16x1xf32>
    %88 = vector.broadcast %87 : vector<16x1xf32> to vector<16x16xf32>
    %89 = arith.subf %85, %88 : vector<16x16xf32>
    %90 = math.exp %89 : vector<16x16xf32>
    %cst_29 = arith.constant dense<0.000000e+00> : vector<16xf32>
    %91 = vector.multi_reduction <add>, %90, %cst_29 [1] : vector<16x16xf32> to vector<16xf32>
    %92 = vector.shape_cast %91 : vector<16xf32> to vector<16x1xf32>
    %93 = tpu.reciprocal %92 {approx = true} : vector<16x1xf32> -> vector<16x1xf32>
    %94 = vector.broadcast %93 : vector<16x1xf32> to vector<16x16xf32>
    %95 = arith.mulf %90, %94 : vector<16x16xf32>
    %96 = arith.truncf %95 : vector<16x16xf32> to vector<16x16xbf16>
    %cst_30 = arith.constant dense<0.000000e+00> : vector<16x8xf32>
    %97 = tpu.matmul %96, %79, %cst_30 {dimension_numbers = #tpu.dot_dimension_numbers<[1], [0], [0], [1], [0, 0, 1, 1], [], []>} : vector<16x16xbf16>, vector<16x8xbf16>, vector<16x8xf32> -> vector<16x8xf32>
    %98 = vector.extract_strided_slice %53 {offsets = [0, 16], sizes = [16, 8], strides = [1, 1]} : vector<16x96xbf16> to vector<16x8xbf16>
    %99 = vector.extract_strided_slice %53 {offsets = [0, 48], sizes = [16, 8], strides = [1, 1]} : vector<16x96xbf16> to vector<16x8xbf16>
    %100 = vector.extract_strided_slice %53 {offsets = [0, 80], sizes = [16, 8], strides = [1, 1]} : vector<16x96xbf16> to vector<16x8xbf16>
    %101 = tpu.transpose %99, [1, 0] : vector<16x8xbf16> -> vector<8x16xbf16>
    %cst_31 = arith.constant dense<0.000000e+00> : vector<16x16xf32>
    %102 = tpu.matmul %98, %101, %cst_31 {dimension_numbers = #tpu.dot_dimension_numbers<[1], [0], [0], [1], [0, 0, 1, 1], [], []>} : vector<16x8xbf16>, vector<8x16xbf16>, vector<16x16xf32> -> vector<16x16xf32>
    %cst_32 = arith.constant 0.353553385 : f32
    %103 = vector.broadcast %cst_32 : f32 to vector<16x16xf32>
    %104 = arith.mulf %102, %103 : vector<16x16xf32>
    %105 = vector.broadcast %55 : vector<1x16xf32> to vector<16x16xf32>
    %106 = arith.addf %104, %105 : vector<16x16xf32>
    %cst_33 = arith.constant dense<0xFF800000> : vector<16xf32>
    %107 = vector.multi_reduction <maximumf>, %106, %cst_33 [1] : vector<16x16xf32> to vector<16xf32>
    %108 = vector.shape_cast %107 : vector<16xf32> to vector<16x1xf32>
    %109 = vector.broadcast %108 : vector<16x1xf32> to vector<16x16xf32>
    %110 = arith.subf %106, %109 : vector<16x16xf32>
    %111 = math.exp %110 : vector<16x16xf32>
    %cst_34 = arith.constant dense<0.000000e+00> : vector<16xf32>
    %112 = vector.multi_reduction <add>, %111, %cst_34 [1] : vector<16x16xf32> to vector<16xf32>
    %113 = vector.shape_cast %112 : vector<16xf32> to vector<16x1xf32>
    %114 = tpu.reciprocal %113 {approx = true} : vector<16x1xf32> -> vector<16x1xf32>
    %115 = vector.broadcast %114 : vector<16x1xf32> to vector<16x16xf32>
    %116 = arith.mulf %111, %115 : vector<16x16xf32>
    %117 = arith.truncf %116 : vector<16x16xf32> to vector<16x16xbf16>
    %cst_35 = arith.constant dense<0.000000e+00> : vector<16x8xf32>
    %118 = tpu.matmul %117, %100, %cst_35 {dimension_numbers = #tpu.dot_dimension_numbers<[1], [0], [0], [1], [0, 0, 1, 1], [], []>} : vector<16x16xbf16>, vector<16x8xbf16>, vector<16x8xf32> -> vector<16x8xf32>
    %119 = vector.extract_strided_slice %53 {offsets = [0, 24], sizes = [16, 8], strides = [1, 1]} : vector<16x96xbf16> to vector<16x8xbf16>
    %120 = vector.extract_strided_slice %53 {offsets = [0, 56], sizes = [16, 8], strides = [1, 1]} : vector<16x96xbf16> to vector<16x8xbf16>
    %121 = vector.extract_strided_slice %53 {offsets = [0, 88], sizes = [16, 8], strides = [1, 1]} : vector<16x96xbf16> to vector<16x8xbf16>
    %122 = tpu.transpose %120, [1, 0] : vector<16x8xbf16> -> vector<8x16xbf16>
    %cst_36 = arith.constant dense<0.000000e+00> : vector<16x16xf32>
    %123 = tpu.matmul %119, %122, %cst_36 {dimension_numbers = #tpu.dot_dimension_numbers<[1], [0], [0], [1], [0, 0, 1, 1], [], []>} : vector<16x8xbf16>, vector<8x16xbf16>, vector<16x16xf32> -> vector<16x16xf32>
    %cst_37 = arith.constant 0.353553385 : f32
    %124 = vector.broadcast %cst_37 : f32 to vector<16x16xf32>
    %125 = arith.mulf %123, %124 : vector<16x16xf32>
    %126 = vector.broadcast %55 : vector<1x16xf32> to vector<16x16xf32>
    %127 = arith.addf %125, %126 : vector<16x16xf32>
    %cst_38 = arith.constant dense<0xFF800000> : vector<16xf32>
    %128 = vector.multi_reduction <maximumf>, %127, %cst_38 [1] : vector<16x16xf32> to vector<16xf32>
    %129 = vector.shape_cast %128 : vector<16xf32> to vector<16x1xf32>
    %130 = vector.broadcast %129 : vector<16x1xf32> to vector<16x16xf32>
    %131 = arith.subf %127, %130 : vector<16x16xf32>
    %132 = math.exp %131 : vector<16x16xf32>
    %cst_39 = arith.constant dense<0.000000e+00> : vector<16xf32>
    %133 = vector.multi_reduction <add>, %132, %cst_39 [1] : vector<16x16xf32> to vector<16xf32>
    %134 = vector.shape_cast %133 : vector<16xf32> to vector<16x1xf32>
    %135 = tpu.reciprocal %134 {approx = true} : vector<16x1xf32> -> vector<16x1xf32>
    %136 = vector.broadcast %135 : vector<16x1xf32> to vector<16x16xf32>
    %137 = arith.mulf %132, %136 : vector<16x16xf32>
    %138 = arith.truncf %137 : vector<16x16xf32> to vector<16x16xbf16>
    %cst_40 = arith.constant dense<0.000000e+00> : vector<16x8xf32>
    %139 = tpu.matmul %138, %121, %cst_40 {dimension_numbers = #tpu.dot_dimension_numbers<[1], [0], [0], [1], [0, 0, 1, 1], [], []>} : vector<16x16xbf16>, vector<16x8xbf16>, vector<16x8xf32> -> vector<16x8xf32>
    %140 = tpu.concatenate %76, %97, %118, %139 in 1 : vector<16x8xf32>, vector<16x8xf32>, vector<16x8xf32>, vector<16x8xf32> -> vector<16x32xf32>
    %141 = arith.truncf %140 : vector<16x32xf32> to vector<16x32xbf16>
    %142 = arith.index_cast %c0_i32 : i32 to index
    %c0_41 = arith.constant 0 : index
    %c0_42 = arith.constant 0 : index
    %143 = vector.load %arg8[%142, %c0_41, %c0_42] : memref<2x32x32xbf16, #tpu.memory_space<vmem>>, vector<1x32x32xbf16>
    %144 = vector.shape_cast %143 : vector<1x32x32xbf16> to vector<32x32xbf16>
    %cst_43 = arith.constant dense<0.000000e+00> : vector<16x32xf32>
    %145 = tpu.matmul %141, %144, %cst_43 {dimension_numbers = #tpu.dot_dimension_numbers<[1], [0], [0], [1], [0, 0, 1, 1], [], []>} : vector<16x32xbf16>, vector<32x32xbf16>, vector<16x32xf32> -> vector<16x32xf32>
    %146 = arith.addf %14, %145 : vector<16x32xf32>
    %147 = vector.broadcast %23 : vector<1x32xf32> to vector<16x32xf32>
    %148 = arith.addf %146, %147 : vector<16x32xf32>
    %cst_44 = arith.constant dense<0.000000e+00> : vector<16xf32>
    %149 = vector.multi_reduction <add>, %148, %cst_44 [1] : vector<16x32xf32> to vector<16xf32>
    %150 = vector.shape_cast %149 : vector<16xf32> to vector<16x1xf32>
    %cst_45 = arith.constant 3.200000e+01 : f32
    %151 = vector.broadcast %cst_45 : f32 to vector<16x1xf32>
    %152 = arith.divf %150, %151 : vector<16x1xf32>
    %153 = vector.broadcast %152 : vector<16x1xf32> to vector<16x32xf32>
    %154 = arith.subf %148, %153 : vector<16x32xf32>
    %155 = arith.mulf %154, %154 : vector<16x32xf32>
    %cst_46 = arith.constant dense<0.000000e+00> : vector<16xf32>
    %156 = vector.multi_reduction <add>, %155, %cst_46 [1] : vector<16x32xf32> to vector<16xf32>
    %157 = vector.shape_cast %156 : vector<16xf32> to vector<16x1xf32>
    %cst_47 = arith.constant 3.200000e+01 : f32
    %158 = vector.broadcast %cst_47 : f32 to vector<16x1xf32>
    %159 = arith.divf %157, %158 : vector<16x1xf32>
    %cst_48 = arith.constant 9.99999974E-6 : f32
    %160 = vector.broadcast %cst_48 : f32 to vector<16x1xf32>
    %161 = arith.addf %159, %160 : vector<16x1xf32>
    %162 = math.rsqrt %161 : vector<16x1xf32>
    %163 = vector.broadcast %162 : vector<16x1xf32> to vector<16x32xf32>
    %164 = arith.mulf %154, %163 : vector<16x32xf32>
    %165 = vector.broadcast %20 : vector<1x32xf32> to vector<16x32xf32>
    %166 = arith.mulf %164, %165 : vector<16x32xf32>
    %167 = vector.broadcast %21 : vector<1x32xf32> to vector<16x32xf32>
    %168 = arith.addf %166, %167 : vector<16x32xf32>
    %169 = arith.truncf %168 : vector<16x32xf32> to vector<16x32xbf16>
    %170 = arith.index_cast %c0_i32 : i32 to index
    %c0_49 = arith.constant 0 : index
    %c0_50 = arith.constant 0 : index
    %171 = vector.load %arg9[%170, %c0_49, %c0_50] : memref<2x32x128xbf16, #tpu.memory_space<vmem>>, vector<1x32x128xbf16>
    %172 = vector.shape_cast %171 : vector<1x32x128xbf16> to vector<32x128xbf16>
    %cst_51 = arith.constant dense<0.000000e+00> : vector<16x128xf32>
    %173 = tpu.matmul %169, %172, %cst_51 {dimension_numbers = #tpu.dot_dimension_numbers<[1], [0], [0], [1], [0, 0, 1, 1], [], []>} : vector<16x32xbf16>, vector<32x128xbf16>, vector<16x128xf32> -> vector<16x128xf32>
    %174 = vector.broadcast %24 : vector<1x128xf32> to vector<16x128xf32>
    %175 = arith.addf %173, %174 : vector<16x128xf32>
    %176 = arith.mulf %175, %175 : vector<16x128xf32>
    %177 = arith.mulf %175, %176 : vector<16x128xf32>
    %cst_52 = arith.constant 4.471500e-02 : f32
    %178 = vector.broadcast %cst_52 : f32 to vector<16x128xf32>
    %179 = arith.mulf %178, %177 : vector<16x128xf32>
    %180 = arith.addf %175, %179 : vector<16x128xf32>
    %cst_53 = arith.constant 0.797884583 : f32
    %181 = vector.broadcast %cst_53 : f32 to vector<16x128xf32>
    %182 = arith.mulf %181, %180 : vector<16x128xf32>
    %183 = math.tanh %182 : vector<16x128xf32>
    %cst_54 = arith.constant 1.000000e+00 : f32
    %184 = vector.broadcast %cst_54 : f32 to vector<16x128xf32>
    %185 = arith.addf %184, %183 : vector<16x128xf32>
    %cst_55 = arith.constant 5.000000e-01 : f32
    %186 = vector.broadcast %cst_55 : f32 to vector<16x128xf32>
    %187 = arith.mulf %186, %185 : vector<16x128xf32>
    %188 = arith.mulf %175, %187 : vector<16x128xf32>
    %189 = arith.truncf %188 : vector<16x128xf32> to vector<16x128xbf16>
    %190 = arith.index_cast %c0_i32 : i32 to index
    %c0_56 = arith.constant 0 : index
    %c0_57 = arith.constant 0 : index
    %191 = vector.load %arg10[%190, %c0_56, %c0_57] : memref<2x128x32xbf16, #tpu.memory_space<vmem>>, vector<1x128x32xbf16>
    %192 = vector.shape_cast %191 : vector<1x128x32xbf16> to vector<128x32xbf16>
    %cst_58 = arith.constant dense<0.000000e+00> : vector<16x32xf32>
    %193 = tpu.matmul %189, %192, %cst_58 {dimension_numbers = #tpu.dot_dimension_numbers<[1], [0], [0], [1], [0, 0, 1, 1], [], []>} : vector<16x128xbf16>, vector<128x32xbf16>, vector<16x32xf32> -> vector<16x32xf32>
    %194 = arith.addf %148, %193 : vector<16x32xf32>
    %195 = vector.broadcast %25 : vector<1x32xf32> to vector<16x32xf32>
    %196 = arith.addf %194, %195 : vector<16x32xf32>
    %c1_i32 = arith.constant 1 : i32
    %197 = arith.index_cast %c1_i32 : i32 to index
    %c0_59 = arith.constant 0 : index
    %c0_60 = arith.constant 0 : index
    %198 = vector.load %arg6[%197, %c0_59, %c0_60] : memref<2x8x128xf32, #tpu.memory_space<vmem>>, vector<1x8x128xf32>
    %199 = vector.shape_cast %198 : vector<1x8x128xf32> to vector<8x128xf32>
    %200 = vector.extract_strided_slice %199 {offsets = [0, 0], sizes = [1, 32], strides = [1, 1]} : vector<8x128xf32> to vector<1x32xf32>
    %201 = vector.extract_strided_slice %199 {offsets = [1, 0], sizes = [1, 32], strides = [1, 1]} : vector<8x128xf32> to vector<1x32xf32>
    %202 = vector.extract_strided_slice %199 {offsets = [2, 0], sizes = [1, 32], strides = [1, 1]} : vector<8x128xf32> to vector<1x32xf32>
    %203 = vector.extract_strided_slice %199 {offsets = [3, 0], sizes = [1, 32], strides = [1, 1]} : vector<8x128xf32> to vector<1x32xf32>
    %204 = vector.extract_strided_slice %199 {offsets = [4, 0], sizes = [1, 96], strides = [1, 1]} : vector<8x128xf32> to vector<1x96xf32>
    %205 = vector.extract_strided_slice %199 {offsets = [5, 0], sizes = [1, 32], strides = [1, 1]} : vector<8x128xf32> to vector<1x32xf32>
    %206 = vector.extract_strided_slice %199 {offsets = [6, 0], sizes = [1, 128], strides = [1, 1]} : vector<8x128xf32> to vector<1x128xf32>
    %207 = vector.extract_strided_slice %199 {offsets = [7, 0], sizes = [1, 32], strides = [1, 1]} : vector<8x128xf32> to vector<1x32xf32>
    %cst_61 = arith.constant dense<0.000000e+00> : vector<16xf32>
    %208 = vector.multi_reduction <add>, %196, %cst_61 [1] : vector<16x32xf32> to vector<16xf32>
    %209 = vector.shape_cast %208 : vector<16xf32> to vector<16x1xf32>
    %cst_62 = arith.constant 3.200000e+01 : f32
    %210 = vector.broadcast %cst_62 : f32 to vector<16x1xf32>
    %211 = arith.divf %209, %210 : vector<16x1xf32>
    %212 = vector.broadcast %211 : vector<16x1xf32> to vector<16x32xf32>
    %213 = arith.subf %196, %212 : vector<16x32xf32>
    %214 = arith.mulf %213, %213 : vector<16x32xf32>
    %cst_63 = arith.constant dense<0.000000e+00> : vector<16xf32>
    %215 = vector.multi_reduction <add>, %214, %cst_63 [1] : vector<16x32xf32> to vector<16xf32>
    %216 = vector.shape_cast %215 : vector<16xf32> to vector<16x1xf32>
    %cst_64 = arith.constant 3.200000e+01 : f32
    %217 = vector.broadcast %cst_64 : f32 to vector<16x1xf32>
    %218 = arith.divf %216, %217 : vector<16x1xf32>
    %cst_65 = arith.constant 9.99999974E-6 : f32
    %219 = vector.broadcast %cst_65 : f32 to vector<16x1xf32>
    %220 = arith.addf %218, %219 : vector<16x1xf32>
    %221 = math.rsqrt %220 : vector<16x1xf32>
    %222 = vector.broadcast %221 : vector<16x1xf32> to vector<16x32xf32>
    %223 = arith.mulf %213, %222 : vector<16x32xf32>
    %224 = vector.broadcast %200 : vector<1x32xf32> to vector<16x32xf32>
    %225 = arith.mulf %223, %224 : vector<16x32xf32>
    %226 = vector.broadcast %201 : vector<1x32xf32> to vector<16x32xf32>
    %227 = arith.addf %225, %226 : vector<16x32xf32>
    %228 = arith.truncf %227 : vector<16x32xf32> to vector<16x32xbf16>
    %229 = arith.index_cast %c1_i32 : i32 to index
    %c0_66 = arith.constant 0 : index
    %c0_67 = arith.constant 0 : index
    %230 = vector.load %arg7[%229, %c0_66, %c0_67] : memref<2x32x96xbf16, #tpu.memory_space<vmem>>, vector<1x32x96xbf16>
    %231 = vector.shape_cast %230 : vector<1x32x96xbf16> to vector<32x96xbf16>
    %cst_68 = arith.constant dense<0.000000e+00> : vector<16x96xf32>
    %232 = tpu.matmul %228, %231, %cst_68 {dimension_numbers = #tpu.dot_dimension_numbers<[1], [0], [0], [1], [0, 0, 1, 1], [], []>} : vector<16x32xbf16>, vector<32x96xbf16>, vector<16x96xf32> -> vector<16x96xf32>
    %233 = vector.broadcast %204 : vector<1x96xf32> to vector<16x96xf32>
    %234 = arith.addf %232, %233 : vector<16x96xf32>
    %235 = arith.truncf %234 : vector<16x96xf32> to vector<16x96xbf16>
    %c0_69 = arith.constant 0 : index
    %c0_70 = arith.constant 0 : index
    %c0_71 = arith.constant 0 : index
    %236 = vector.load %arg2[%c0_69, %c0_70, %c0_71] : memref<1x1x16xf32, #tpu.memory_space<vmem>>, vector<1x1x16xf32>
    %237 = vector.shape_cast %236 : vector<1x1x16xf32> to vector<1x16xf32>
    %238 = vector.extract_strided_slice %235 {offsets = [0, 0], sizes = [16, 8], strides = [1, 1]} : vector<16x96xbf16> to vector<16x8xbf16>
    %239 = vector.extract_strided_slice %235 {offsets = [0, 32], sizes = [16, 8], strides = [1, 1]} : vector<16x96xbf16> to vector<16x8xbf16>
    %240 = vector.extract_strided_slice %235 {offsets = [0, 64], sizes = [16, 8], strides = [1, 1]} : vector<16x96xbf16> to vector<16x8xbf16>
    %241 = tpu.transpose %239, [1, 0] : vector<16x8xbf16> -> vector<8x16xbf16>
    %cst_72 = arith.constant dense<0.000000e+00> : vector<16x16xf32>
    %242 = tpu.matmul %238, %241, %cst_72 {dimension_numbers = #tpu.dot_dimension_numbers<[1], [0], [0], [1], [0, 0, 1, 1], [], []>} : vector<16x8xbf16>, vector<8x16xbf16>, vector<16x16xf32> -> vector<16x16xf32>
    %cst_73 = arith.constant 0.353553385 : f32
    %243 = vector.broadcast %cst_73 : f32 to vector<16x16xf32>
    %244 = arith.mulf %242, %243 : vector<16x16xf32>
    %245 = vector.broadcast %237 : vector<1x16xf32> to vector<16x16xf32>
    %246 = arith.addf %244, %245 : vector<16x16xf32>
    %cst_74 = arith.constant dense<0xFF800000> : vector<16xf32>
    %247 = vector.multi_reduction <maximumf>, %246, %cst_74 [1] : vector<16x16xf32> to vector<16xf32>
    %248 = vector.shape_cast %247 : vector<16xf32> to vector<16x1xf32>
    %249 = vector.broadcast %248 : vector<16x1xf32> to vector<16x16xf32>
    %250 = arith.subf %246, %249 : vector<16x16xf32>
    %251 = math.exp %250 : vector<16x16xf32>
    %cst_75 = arith.constant dense<0.000000e+00> : vector<16xf32>
    %252 = vector.multi_reduction <add>, %251, %cst_75 [1] : vector<16x16xf32> to vector<16xf32>
    %253 = vector.shape_cast %252 : vector<16xf32> to vector<16x1xf32>
    %254 = tpu.reciprocal %253 {approx = true} : vector<16x1xf32> -> vector<16x1xf32>
    %255 = vector.broadcast %254 : vector<16x1xf32> to vector<16x16xf32>
    %256 = arith.mulf %251, %255 : vector<16x16xf32>
    %257 = arith.truncf %256 : vector<16x16xf32> to vector<16x16xbf16>
    %cst_76 = arith.constant dense<0.000000e+00> : vector<16x8xf32>
    %258 = tpu.matmul %257, %240, %cst_76 {dimension_numbers = #tpu.dot_dimension_numbers<[1], [0], [0], [1], [0, 0, 1, 1], [], []>} : vector<16x16xbf16>, vector<16x8xbf16>, vector<16x8xf32> -> vector<16x8xf32>
    %259 = vector.extract_strided_slice %235 {offsets = [0, 8], sizes = [16, 8], strides = [1, 1]} : vector<16x96xbf16> to vector<16x8xbf16>
    %260 = vector.extract_strided_slice %235 {offsets = [0, 40], sizes = [16, 8], strides = [1, 1]} : vector<16x96xbf16> to vector<16x8xbf16>
    %261 = vector.extract_strided_slice %235 {offsets = [0, 72], sizes = [16, 8], strides = [1, 1]} : vector<16x96xbf16> to vector<16x8xbf16>
    %262 = tpu.transpose %260, [1, 0] : vector<16x8xbf16> -> vector<8x16xbf16>
    %cst_77 = arith.constant dense<0.000000e+00> : vector<16x16xf32>
    %263 = tpu.matmul %259, %262, %cst_77 {dimension_numbers = #tpu.dot_dimension_numbers<[1], [0], [0], [1], [0, 0, 1, 1], [], []>} : vector<16x8xbf16>, vector<8x16xbf16>, vector<16x16xf32> -> vector<16x16xf32>
    %cst_78 = arith.constant 0.353553385 : f32
    %264 = vector.broadcast %cst_78 : f32 to vector<16x16xf32>
    %265 = arith.mulf %263, %264 : vector<16x16xf32>
    %266 = vector.broadcast %237 : vector<1x16xf32> to vector<16x16xf32>
    %267 = arith.addf %265, %266 : vector<16x16xf32>
    %cst_79 = arith.constant dense<0xFF800000> : vector<16xf32>
    %268 = vector.multi_reduction <maximumf>, %267, %cst_79 [1] : vector<16x16xf32> to vector<16xf32>
    %269 = vector.shape_cast %268 : vector<16xf32> to vector<16x1xf32>
    %270 = vector.broadcast %269 : vector<16x1xf32> to vector<16x16xf32>
    %271 = arith.subf %267, %270 : vector<16x16xf32>
    %272 = math.exp %271 : vector<16x16xf32>
    %cst_80 = arith.constant dense<0.000000e+00> : vector<16xf32>
    %273 = vector.multi_reduction <add>, %272, %cst_80 [1] : vector<16x16xf32> to vector<16xf32>
    %274 = vector.shape_cast %273 : vector<16xf32> to vector<16x1xf32>
    %275 = tpu.reciprocal %274 {approx = true} : vector<16x1xf32> -> vector<16x1xf32>
    %276 = vector.broadcast %275 : vector<16x1xf32> to vector<16x16xf32>
    %277 = arith.mulf %272, %276 : vector<16x16xf32>
    %278 = arith.truncf %277 : vector<16x16xf32> to vector<16x16xbf16>
    %cst_81 = arith.constant dense<0.000000e+00> : vector<16x8xf32>
    %279 = tpu.matmul %278, %261, %cst_81 {dimension_numbers = #tpu.dot_dimension_numbers<[1], [0], [0], [1], [0, 0, 1, 1], [], []>} : vector<16x16xbf16>, vector<16x8xbf16>, vector<16x8xf32> -> vector<16x8xf32>
    %280 = vector.extract_strided_slice %235 {offsets = [0, 16], sizes = [16, 8], strides = [1, 1]} : vector<16x96xbf16> to vector<16x8xbf16>
    %281 = vector.extract_strided_slice %235 {offsets = [0, 48], sizes = [16, 8], strides = [1, 1]} : vector<16x96xbf16> to vector<16x8xbf16>
    %282 = vector.extract_strided_slice %235 {offsets = [0, 80], sizes = [16, 8], strides = [1, 1]} : vector<16x96xbf16> to vector<16x8xbf16>
    %283 = tpu.transpose %281, [1, 0] : vector<16x8xbf16> -> vector<8x16xbf16>
    %cst_82 = arith.constant dense<0.000000e+00> : vector<16x16xf32>
    %284 = tpu.matmul %280, %283, %cst_82 {dimension_numbers = #tpu.dot_dimension_numbers<[1], [0], [0], [1], [0, 0, 1, 1], [], []>} : vector<16x8xbf16>, vector<8x16xbf16>, vector<16x16xf32> -> vector<16x16xf32>
    %cst_83 = arith.constant 0.353553385 : f32
    %285 = vector.broadcast %cst_83 : f32 to vector<16x16xf32>
    %286 = arith.mulf %284, %285 : vector<16x16xf32>
    %287 = vector.broadcast %237 : vector<1x16xf32> to vector<16x16xf32>
    %288 = arith.addf %286, %287 : vector<16x16xf32>
    %cst_84 = arith.constant dense<0xFF800000> : vector<16xf32>
    %289 = vector.multi_reduction <maximumf>, %288, %cst_84 [1] : vector<16x16xf32> to vector<16xf32>
    %290 = vector.shape_cast %289 : vector<16xf32> to vector<16x1xf32>
    %291 = vector.broadcast %290 : vector<16x1xf32> to vector<16x16xf32>
    %292 = arith.subf %288, %291 : vector<16x16xf32>
    %293 = math.exp %292 : vector<16x16xf32>
    %cst_85 = arith.constant dense<0.000000e+00> : vector<16xf32>
    %294 = vector.multi_reduction <add>, %293, %cst_85 [1] : vector<16x16xf32> to vector<16xf32>
    %295 = vector.shape_cast %294 : vector<16xf32> to vector<16x1xf32>
    %296 = tpu.reciprocal %295 {approx = true} : vector<16x1xf32> -> vector<16x1xf32>
    %297 = vector.broadcast %296 : vector<16x1xf32> to vector<16x16xf32>
    %298 = arith.mulf %293, %297 : vector<16x16xf32>
    %299 = arith.truncf %298 : vector<16x16xf32> to vector<16x16xbf16>
    %cst_86 = arith.constant dense<0.000000e+00> : vector<16x8xf32>
    %300 = tpu.matmul %299, %282, %cst_86 {dimension_numbers = #tpu.dot_dimension_numbers<[1], [0], [0], [1], [0, 0, 1, 1], [], []>} : vector<16x16xbf16>, vector<16x8xbf16>, vector<16x8xf32> -> vector<16x8xf32>
    %301 = vector.extract_strided_slice %235 {offsets = [0, 24], sizes = [16, 8], strides = [1, 1]} : vector<16x96xbf16> to vector<16x8xbf16>
    %302 = vector.extract_strided_slice %235 {offsets = [0, 56], sizes = [16, 8], strides = [1, 1]} : vector<16x96xbf16> to vector<16x8xbf16>
    %303 = vector.extract_strided_slice %235 {offsets = [0, 88], sizes = [16, 8], strides = [1, 1]} : vector<16x96xbf16> to vector<16x8xbf16>
    %304 = tpu.transpose %302, [1, 0] : vector<16x8xbf16> -> vector<8x16xbf16>
    %cst_87 = arith.constant dense<0.000000e+00> : vector<16x16xf32>
    %305 = tpu.matmul %301, %304, %cst_87 {dimension_numbers = #tpu.dot_dimension_numbers<[1], [0], [0], [1], [0, 0, 1, 1], [], []>} : vector<16x8xbf16>, vector<8x16xbf16>, vector<16x16xf32> -> vector<16x16xf32>
    %cst_88 = arith.constant 0.353553385 : f32
    %306 = vector.broadcast %cst_88 : f32 to vector<16x16xf32>
    %307 = arith.mulf %305, %306 : vector<16x16xf32>
    %308 = vector.broadcast %237 : vector<1x16xf32> to vector<16x16xf32>
    %309 = arith.addf %307, %308 : vector<16x16xf32>
    %cst_89 = arith.constant dense<0xFF800000> : vector<16xf32>
    %310 = vector.multi_reduction <maximumf>, %309, %cst_89 [1] : vector<16x16xf32> to vector<16xf32>
    %311 = vector.shape_cast %310 : vector<16xf32> to vector<16x1xf32>
    %312 = vector.broadcast %311 : vector<16x1xf32> to vector<16x16xf32>
    %313 = arith.subf %309, %312 : vector<16x16xf32>
    %314 = math.exp %313 : vector<16x16xf32>
    %cst_90 = arith.constant dense<0.000000e+00> : vector<16xf32>
    %315 = vector.multi_reduction <add>, %314, %cst_90 [1] : vector<16x16xf32> to vector<16xf32>
    %316 = vector.shape_cast %315 : vector<16xf32> to vector<16x1xf32>
    %317 = tpu.reciprocal %316 {approx = true} : vector<16x1xf32> -> vector<16x1xf32>
    %318 = vector.broadcast %317 : vector<16x1xf32> to vector<16x16xf32>
    %319 = arith.mulf %314, %318 : vector<16x16xf32>
    %320 = arith.truncf %319 : vector<16x16xf32> to vector<16x16xbf16>
    %cst_91 = arith.constant dense<0.000000e+00> : vector<16x8xf32>
    %321 = tpu.matmul %320, %303, %cst_91 {dimension_numbers = #tpu.dot_dimension_numbers<[1], [0], [0], [1], [0, 0, 1, 1], [], []>} : vector<16x16xbf16>, vector<16x8xbf16>, vector<16x8xf32> -> vector<16x8xf32>
    %322 = tpu.concatenate %258, %279, %300, %321 in 1 : vector<16x8xf32>, vector<16x8xf32>, vector<16x8xf32>, vector<16x8xf32> -> vector<16x32xf32>
    %323 = arith.truncf %322 : vector<16x32xf32> to vector<16x32xbf16>
    %324 = arith.index_cast %c1_i32 : i32 to index
    %c0_92 = arith.constant 0 : index
    %c0_93 = arith.constant 0 : index
    %325 = vector.load %arg8[%324, %c0_92, %c0_93] : memref<2x32x32xbf16, #tpu.memory_space<vmem>>, vector<1x32x32xbf16>
    %326 = vector.shape_cast %325 : vector<1x32x32xbf16> to vector<32x32xbf16>
    %cst_94 = arith.constant dense<0.000000e+00> : vector<16x32xf32>
    %327 = tpu.matmul %323, %326, %cst_94 {dimension_numbers = #tpu.dot_dimension_numbers<[1], [0], [0], [1], [0, 0, 1, 1], [], []>} : vector<16x32xbf16>, vector<32x32xbf16>, vector<16x32xf32> -> vector<16x32xf32>
    %328 = arith.addf %196, %327 : vector<16x32xf32>
    %329 = vector.broadcast %205 : vector<1x32xf32> to vector<16x32xf32>
    %330 = arith.addf %328, %329 : vector<16x32xf32>
    %cst_95 = arith.constant dense<0.000000e+00> : vector<16xf32>
    %331 = vector.multi_reduction <add>, %330, %cst_95 [1] : vector<16x32xf32> to vector<16xf32>
    %332 = vector.shape_cast %331 : vector<16xf32> to vector<16x1xf32>
    %cst_96 = arith.constant 3.200000e+01 : f32
    %333 = vector.broadcast %cst_96 : f32 to vector<16x1xf32>
    %334 = arith.divf %332, %333 : vector<16x1xf32>
    %335 = vector.broadcast %334 : vector<16x1xf32> to vector<16x32xf32>
    %336 = arith.subf %330, %335 : vector<16x32xf32>
    %337 = arith.mulf %336, %336 : vector<16x32xf32>
    %cst_97 = arith.constant dense<0.000000e+00> : vector<16xf32>
    %338 = vector.multi_reduction <add>, %337, %cst_97 [1] : vector<16x32xf32> to vector<16xf32>
    %339 = vector.shape_cast %338 : vector<16xf32> to vector<16x1xf32>
    %cst_98 = arith.constant 3.200000e+01 : f32
    %340 = vector.broadcast %cst_98 : f32 to vector<16x1xf32>
    %341 = arith.divf %339, %340 : vector<16x1xf32>
    %cst_99 = arith.constant 9.99999974E-6 : f32
    %342 = vector.broadcast %cst_99 : f32 to vector<16x1xf32>
    %343 = arith.addf %341, %342 : vector<16x1xf32>
    %344 = math.rsqrt %343 : vector<16x1xf32>
    %345 = vector.broadcast %344 : vector<16x1xf32> to vector<16x32xf32>
    %346 = arith.mulf %336, %345 : vector<16x32xf32>
    %347 = vector.broadcast %202 : vector<1x32xf32> to vector<16x32xf32>
    %348 = arith.mulf %346, %347 : vector<16x32xf32>
    %349 = vector.broadcast %203 : vector<1x32xf32> to vector<16x32xf32>
    %350 = arith.addf %348, %349 : vector<16x32xf32>
    %351 = arith.truncf %350 : vector<16x32xf32> to vector<16x32xbf16>
    %352 = arith.index_cast %c1_i32 : i32 to index
    %c0_100 = arith.constant 0 : index
    %c0_101 = arith.constant 0 : index
    %353 = vector.load %arg9[%352, %c0_100, %c0_101] : memref<2x32x128xbf16, #tpu.memory_space<vmem>>, vector<1x32x128xbf16>
    %354 = vector.shape_cast %353 : vector<1x32x128xbf16> to vector<32x128xbf16>
    %cst_102 = arith.constant dense<0.000000e+00> : vector<16x128xf32>
    %355 = tpu.matmul %351, %354, %cst_102 {dimension_numbers = #tpu.dot_dimension_numbers<[1], [0], [0], [1], [0, 0, 1, 1], [], []>} : vector<16x32xbf16>, vector<32x128xbf16>, vector<16x128xf32> -> vector<16x128xf32>
    %356 = vector.broadcast %206 : vector<1x128xf32> to vector<16x128xf32>
    %357 = arith.addf %355, %356 : vector<16x128xf32>
    %358 = arith.mulf %357, %357 : vector<16x128xf32>
    %359 = arith.mulf %357, %358 : vector<16x128xf32>
    %cst_103 = arith.constant 4.471500e-02 : f32
    %360 = vector.broadcast %cst_103 : f32 to vector<16x128xf32>
    %361 = arith.mulf %360, %359 : vector<16x128xf32>
    %362 = arith.addf %357, %361 : vector<16x128xf32>
    %cst_104 = arith.constant 0.797884583 : f32
    %363 = vector.broadcast %cst_104 : f32 to vector<16x128xf32>
    %364 = arith.mulf %363, %362 : vector<16x128xf32>
    %365 = math.tanh %364 : vector<16x128xf32>
    %cst_105 = arith.constant 1.000000e+00 : f32
    %366 = vector.broadcast %cst_105 : f32 to vector<16x128xf32>
    %367 = arith.addf %366, %365 : vector<16x128xf32>
    %cst_106 = arith.constant 5.000000e-01 : f32
    %368 = vector.broadcast %cst_106 : f32 to vector<16x128xf32>
    %369 = arith.mulf %368, %367 : vector<16x128xf32>
    %370 = arith.mulf %357, %369 : vector<16x128xf32>
    %371 = arith.truncf %370 : vector<16x128xf32> to vector<16x128xbf16>
    %372 = arith.index_cast %c1_i32 : i32 to index
    %c0_107 = arith.constant 0 : index
    %c0_108 = arith.constant 0 : index
    %373 = vector.load %arg10[%372, %c0_107, %c0_108] : memref<2x128x32xbf16, #tpu.memory_space<vmem>>, vector<1x128x32xbf16>
    %374 = vector.shape_cast %373 : vector<1x128x32xbf16> to vector<128x32xbf16>
    %cst_109 = arith.constant dense<0.000000e+00> : vector<16x32xf32>
    %375 = tpu.matmul %371, %374, %cst_109 {dimension_numbers = #tpu.dot_dimension_numbers<[1], [0], [0], [1], [0, 0, 1, 1], [], []>} : vector<16x128xbf16>, vector<128x32xbf16>, vector<16x32xf32> -> vector<16x32xf32>
    %376 = arith.addf %330, %375 : vector<16x32xf32>
    %377 = vector.broadcast %207 : vector<1x32xf32> to vector<16x32xf32>
    %378 = arith.addf %376, %377 : vector<16x32xf32>
    %c2_i32 = arith.constant 2 : i32
    %379 = vector.extract_strided_slice %378 {offsets = [0, 0], sizes = [1, 32], strides = [1, 1]} : vector<16x32xf32> to vector<1x32xf32>
    %cst_110 = arith.constant dense<0.000000e+00> : vector<1xf32>
    %380 = vector.multi_reduction <add>, %379, %cst_110 [1] : vector<1x32xf32> to vector<1xf32>
    %381 = vector.shape_cast %380 : vector<1xf32> to vector<1x1xf32>
    %cst_111 = arith.constant 3.200000e+01 : f32
    %382 = vector.broadcast %cst_111 : f32 to vector<1x1xf32>
    %383 = arith.divf %381, %382 : vector<1x1xf32>
    %384 = vector.broadcast %383 : vector<1x1xf32> to vector<1x32xf32>
    %385 = arith.subf %379, %384 : vector<1x32xf32>
    %386 = arith.mulf %385, %385 : vector<1x32xf32>
    %cst_112 = arith.constant dense<0.000000e+00> : vector<1xf32>
    %387 = vector.multi_reduction <add>, %386, %cst_112 [1] : vector<1x32xf32> to vector<1xf32>
    %388 = vector.shape_cast %387 : vector<1xf32> to vector<1x1xf32>
    %cst_113 = arith.constant 3.200000e+01 : f32
    %389 = vector.broadcast %cst_113 : f32 to vector<1x1xf32>
    %390 = arith.divf %388, %389 : vector<1x1xf32>
    %cst_114 = arith.constant 9.99999974E-6 : f32
    %391 = vector.broadcast %cst_114 : f32 to vector<1x1xf32>
    %392 = arith.addf %390, %391 : vector<1x1xf32>
    %393 = math.rsqrt %392 : vector<1x1xf32>
    %394 = vector.broadcast %393 : vector<1x1xf32> to vector<1x32xf32>
    %395 = arith.mulf %385, %394 : vector<1x32xf32>
    %396 = arith.mulf %395, %2 : vector<1x32xf32>
    %397 = arith.addf %396, %3 : vector<1x32xf32>
    %398 = arith.truncf %397 : vector<1x32xf32> to vector<1x32xbf16>
    %c0_115 = arith.constant 0 : index
    %c0_116 = arith.constant 0 : index
    %399 = vector.load %arg11[%c0_115, %c0_116] : memref<32x32xbf16, #tpu.memory_space<vmem>>, vector<32x32xbf16>
    %cst_117 = arith.constant dense<0.000000e+00> : vector<1x32xf32>
    %400 = tpu.matmul %398, %399, %cst_117 {dimension_numbers = #tpu.dot_dimension_numbers<[1], [0], [0], [1], [0, 0, 1, 1], [], []>} : vector<1x32xbf16>, vector<32x32xbf16>, vector<1x32xf32> -> vector<1x32xf32>
    %401 = arith.addf %400, %4 : vector<1x32xf32>
    %cst_118 = arith.constant 0.000000e+00 : f32
    %402 = vector.broadcast %cst_118 : f32 to vector<1x32xf32>
    %403 = arith.maximumf %401, %402 : vector<1x32xf32>
    %404 = arith.truncf %403 : vector<1x32xf32> to vector<1x32xbf16>
    %c0_119 = arith.constant 0 : index
    %c0_120 = arith.constant 0 : index
    %405 = vector.load %arg12[%c0_119, %c0_120] : memref<32x128xbf16, #tpu.memory_space<vmem>>, vector<32x128xbf16>
    %cst_121 = arith.constant dense<0.000000e+00> : vector<1x128xf32>
    %406 = tpu.matmul %404, %405, %cst_121 {dimension_numbers = #tpu.dot_dimension_numbers<[1], [0], [0], [1], [0, 0, 1, 1], [], []>} : vector<1x32xbf16>, vector<32x128xbf16>, vector<1x128xf32> -> vector<1x128xf32>
    %407 = arith.addf %406, %5 : vector<1x128xf32>
    %c0_122 = arith.constant 0 : index
    %c0_123 = arith.constant 0 : index
    %c0_124 = arith.constant 0 : index
    %408 = vector.load %arg13[%c0_122, %c0_123, %c0_124] : memref<1x1x128xf32, #tpu.memory_space<vmem>>, vector<1x1x128xf32>
    %409 = vector.shape_cast %408 : vector<1x1x128xf32> to vector<1x128xf32>
    %410 = vector.shape_cast %407 : vector<1x128xf32> to vector<1x1x128xf32>
    tpu.vector_store %arg13[%c0_122, %c0_123, %c0_124], %410 {strides = array<i32>} : memref<1x1x128xf32, #tpu.memory_space<vmem>>, vector<1x1x128xf32>,
    return
  }
  func.func @transform_0(%arg0: i32) -> (i32, i32, i32) {
    %c0_i32 = arith.constant 0 : i32
    %c0_i32_0 = arith.constant 0 : i32
    %c0_i32_1 = arith.constant 0 : i32
    return %arg0, %c0_i32, %c0_i32_0 : i32, i32, i32
  }
  func.func @transform_1(%arg0: i32) -> (i32, i32, i32) {
    %c0_i32 = arith.constant 0 : i32
    %c0_i32_0 = arith.constant 0 : i32
    %c0_i32_1 = arith.constant 0 : i32
    return %arg0, %c0_i32, %c0_i32_0 : i32, i32, i32
  }
  func.func @transform_2(%arg0: i32) -> (i32, i32) {
    %c0_i32 = arith.constant 0 : i32
    %c0_i32_0 = arith.constant 0 : i32
    %c0_i32_1 = arith.constant 0 : i32
    return %c0_i32, %c0_i32_0 : i32, i32
  }
  func.func @transform_3(%arg0: i32) -> (i32, i32) {
    %c0_i32 = arith.constant 0 : i32
    %c0_i32_0 = arith.constant 0 : i32
    %c0_i32_1 = arith.constant 0 : i32
    return %c0_i32, %c0_i32_0 : i32, i32
  }
  func.func @transform_4(%arg0: i32) -> (i32, i32) {
    %c0_i32 = arith.constant 0 : i32
    %c0_i32_0 = arith.constant 0 : i32
    %c0_i32_1 = arith.constant 0 : i32
    return %c0_i32, %c0_i32_0 : i32, i32
  }
  func.func @transform_5(%arg0: i32) -> (i32, i32, i32) {
    %c0_i32 = arith.constant 0 : i32
    %c0_i32_0 = arith.constant 0 : i32
    %c0_i32_1 = arith.constant 0 : i32
    %c0_i32_2 = arith.constant 0 : i32
    return %c0_i32, %c0_i32_0, %c0_i32_1 : i32, i32, i32
  }
  func.func @transform_6(%arg0: i32) -> (i32, i32, i32) {
    %c0_i32 = arith.constant 0 : i32
    %c0_i32_0 = arith.constant 0 : i32
    %c0_i32_1 = arith.constant 0 : i32
    %c0_i32_2 = arith.constant 0 : i32
    return %c0_i32, %c0_i32_0, %c0_i32_1 : i32, i32, i32
  }
  func.func @transform_7(%arg0: i32) -> (i32, i32, i32) {
    %c0_i32 = arith.constant 0 : i32
    %c0_i32_0 = arith.constant 0 : i32
    %c0_i32_1 = arith.constant 0 : i32
    %c0_i32_2 = arith.constant 0 : i32
    return %c0_i32, %c0_i32_0, %c0_i32_1 : i32, i32, i32
  }
  func.func @transform_8(%arg0: i32) -> (i32, i32, i32) {
    %c0_i32 = arith.constant 0 : i32
    %c0_i32_0 = arith.constant 0 : i32
    %c0_i32_1 = arith.constant 0 : i32
    %c0_i32_2 = arith.constant 0 : i32
    return %c0_i32, %c0_i32_0, %c0_i32_1 : i32, i32, i32
  }
  func.func @transform_9(%arg0: i32) -> (i32, i32, i32) {
    %c0_i32 = arith.constant 0 : i32
    %c0_i32_0 = arith.constant 0 : i32
    %c0_i32_1 = arith.constant 0 : i32
    %c0_i32_2 = arith.constant 0 : i32
    return %c0_i32, %c0_i32_0, %c0_i32_1 : i32, i32, i32
  }
  func.func @transform_10(%arg0: i32) -> (i32, i32) {
    %c0_i32 = arith.constant 0 : i32
    %c0_i32_0 = arith.constant 0 : i32
    %c0_i32_1 = arith.constant 0 : i32
    return %c0_i32, %c0_i32_0 : i32, i32
  }
  func.func @transform_11(%arg0: i32) -> (i32, i32) {
    %c0_i32 = arith.constant 0 : i32
    %c0_i32_0 = arith.constant 0 : i32
    %c0_i32_1 = arith.constant 0 : i32
    return %c0_i32, %c0_i32_0 : i32, i32
  }
  func.func @transform_12(%arg0: i32) -> (i32, i32, i32) {
    %c0_i32 = arith.constant 0 : i32
    %c0_i32_0 = arith.constant 0 : i32
    %c0_i32_1 = arith.constant 0 : i32
    return %arg0, %c0_i32, %c0_i32_0 : i32, i32, i32
  }
}

</mosaic_0001>

<bundles_post_ra>
// kernel: transformer_discriminator_forward.1
= control target key start
LH: loop header
LB: loop body
LE: loop exit
PB: predicated region body
PF: predicated region fallthrough
CT: control target
= control target key end

     0   :  { %s3937_s0 = inlined_call_operand.vmem [shape: f32[2,16,16], index: 0, kind: input, shape index: {}]   ;;  %s3938_s1 = inlined_call_operand.vmem [shape: f32[2,1,16], index: 1, kind: input, shape index: {}]   ;;  %s3939_s2 = inlined_call_operand.vmem [shape: f32[16,32], index: 2, kind: input, shape index: {}]   ;;  %s3940_s3 = inlined_call_operand.vmem [shape: bf16[16,32], index: 3, kind: input, shape index: {}]   ;;  %s3941_s4 = inlined_call_operand.vmem [shape: f32[8,128], index: 4, kind: input, shape index: {}]   ;;  %s3942_s5 = inlined_call_operand.vmem [shape: f32[2,8,128], index: 5, kind: input, shape index: {}]   ;;  %s3943_s6 = inlined_call_operand.vmem [shape: bf16[2,32,96], index: 6, kind: input, shape index: {}]   ;;  %s3944_s7 = inlined_call_operand.vmem [shape: bf16[2,32,32], index: 7, kind: input, shape index: {}]   ;;  %s3945_s8 = inlined_call_operand.vmem [shape: bf16[2,32,128], index: 8, kind: input, shape index: {}]   ;;  %s3946_s9 = inlined_call_operand.vmem [shape: bf16[2,128,32], index: 9, kind: input, shape index: {}]   ;;  %s3947_s10 = inlined_call_operand.vmem [shape: bf16[32,32], index: 10, kind: input, shape index: {}]   ;;  %s3948_s11 = inlined_call_operand.vmem [shape: bf16[32,128], index: 11, kind: input, shape index: {}]   ;;  %s3949_s12 = inlined_call_operand.hbm [shape: f32[2,1,128], index: 12, kind: output, shape index: {}]  }
   0x1   :  { %3962 = sst [smem:[#allocation5_spill]] %s3937_s0 }
   0x2   :  { %17 = vsyncpa [#allocation3], 0 }
   0x3   :  { %19 = vsyncpa [#allocation3 + $0x1], 0  ;;  %s3339_s21 = smov 0   ;;  %s3341_s22 = smov 0  }
   0x4   :  { %s3343_s23 = smov 0   ;;  %s3345_s24 = smov 0  }
   0x5 LB: > { %s3360_s25 = sadd.s32 4294967295, %s3255_s24   ;;  %s2604_s26 = sadd.s32 4294967294, %s3255_s24   ;;  %s3255_s24 = sphi %s3345_s24, %s3981_s24   ;;  %s3251_s23 = sphi %s3343_s23, %s3980_s23   ;;  %s3247_s22 = sphi %s3341_s22, %s3979_s22   ;;  %s3243_s21 = sphi %s3339_s21, %s3978_s21  }
   0x6   : > { %s3364_s27 = sadd.s32 1, %s3255_s24   ;;  %s294_s28 = sadd.s32 1, %s3251_s23 }
   0x7   : > { %s291_s29 = ssub.s32 %s3255_s24, %s3364_s27  ;;  %p304_p0 = scmp.ne.s32.totalorder %s3251_s23, %s3247_s22 }
   0x8   : > { %p292_p1 = scmp.eq.s32.totalorder %s291_s29, 0  ;;  %p305_p2 = scmp.eq.s32.totalorder %s3360_s25, 1 }
   0x9   : > { %p310_p3 = scmp.ne.s32.totalorder %s3247_s22, %s3243_s21  ;;  %p311_p4 = scmp.eq.s32.totalorder %s2604_s26, 1 }
   0xa   : > { %s3375_s30 = scalar_select %p292_p1, %s3251_s23, %s294_s28  }
   0xb   : > { %p3377_p5 = por %p305_p2, %p304_p0  ;;  %p3381_p6 = por %p311_p4, %p310_p3 }
   0xc   : > { %p2607_p7 = scmp.ge.s32.totalorder %s3255_s24, 1  ;;  %p373_p8 = scmp.lt.s32.totalorder %s3255_s24, 3 }
   0xe   : > { %p374_p9 = pnand %p2607_p7, %p373_p8 }
   0xf   : > { %v3069_v0 = vld [vmem:[%s3940_s3] sm:$0xff] (!%p374_p9)   ;;  %v3257_v1 = vmov (!%p374_p9), 0.0   ;;  %p417_p10 = scmp.lt.s32.totalorder (!%p374_p9), %s3360_s25, 1  ;;  %vm3258_vm0 = vmmov (!%p374_p9), 0   ;;  %s3965_s0 = sld [smem:[#allocation5_spill]] (!%p374_p9)  ;;  %vm444_vm1 = vcmask (!%p374_p9), 130048   ;;  %v434_v5 = vlaneseq (!%p374_p9) }
  0x10   : > { %377 = sbr.rel (%p374_p9) target bundleno = 6696 (0x1a28), region = 68  ;;  %2778 = vmatprep.subr.bf16.mxu0 (!%p374_p9), %v3257_v1  ;;  %2798 = vmatprep.subr.bf16.mxu1 (!%p374_p9), %v3257_v1  ;;  %v426_v8 = vld [vmem:[%s3941_s4] sm:$0xff] (!%p374_p9)  ;;  %v433_v14 = vld [vmem:[%s3939_s2 + $0x8] sm:$0xff] (!%p374_p9)  ;;  %vm492_vm2 = vcmask (!%p374_p9), 261120   ;;  %s3260_s19 = smov (!%p374_p9), 96   ;;  %vm602_vm3 = vcmask (!%p374_p9), 64512  }
  0x11   : > { %2779 = vmatpush3.bf16.msra.mxu0 (!%p374_p9), %v3069_v0  ;;  %2780 = vmatprep.mubr.msk.bf16.mxu0 (!%p374_p9), %vm3258_vm0, %v3257_v1  ;;  %v3408_v6 = vshrl.u32 (!%p374_p9), %v434_v5, 7  ;;  %v432_v10 = vld [vmem:[%s3939_s2] sm:$0xff] (!%p374_p9)  ;;  %v3071_v33 = vld [vmem:[%s3943_s6 + $0x8] sm:$0xff] (!%p374_p9)   ;;  %s3961_s20 = smov (!%p374_p9), 120   ;;  %s3960_s28 = smov (!%p374_p9), 80   ;;  %vm1133_vm4 = vcmask (!%p374_p9), 195584  }
  0x12   : > { %2784 = vmatprep.subr.bf16.mxu0 (!%p374_p9), %v3257_v1  ;;  %2800 = vmatprep.mubr.msk.bf16.mxu1 (!%p374_p9), %vm3258_vm0, %v3257_v1  ;;  %v3070_v32 = vld [vmem:[%s3943_s6] sm:$0xff] (!%p374_p9)   ;;  %s3950_s29 = smov (!%p374_p9), 104   ;;  %s3956_s15 = smov (!%p374_p9), 72   ;;  %vm2380_vm5 = vcmask (!%p374_p9), 253952  }
  0x13   : > { %v3411_v7 = vsub.s32 (!%p374_p9), 0, %v3408_v6  ;;  %v3446_v40 = vld [vmem:[%s3942_s5] sm:$0xff] (!%p374_p9)  ;;  %v528_v44 = vsub.s32 (!%p374_p9), 1, %v3408_v6  ;;  %v539_v53 = vsub.s32 (!%p374_p9), 4, %v3408_v6  ;;  %s3953_s16 = smov (!%p374_p9), 56  }
  0x15   : > { %v437_v9 = vrot.slane (!%p374_p9), %v426_v8, %v3411_v7  ;;  %v523_v42 = vrot.slane (!%p374_p9), %v3446_v40, %v3411_v7  ;;  %v529_v48 = vrot.slane (!%p374_p9), %v3446_v40, %v528_v44  ;;  %v540_v54 = vrot.slane (!%p374_p9), %v3446_v40, %v539_v53 }
  0x17   : > { %s3396_s17 = scalar_select %p417_p10, %s3360_s25, 1 }
  0x19   : > { %s2701_s18 = sshll.u32 %s3396_s17, 4 }
  0x1a   : > { %s421_s26 = scalar_lea.vmem %s3965_s0, %s2701_s18  ;;  %s3259_s18 = smov 88  }
  0x1b   : > { %v427_v2 = vld [vmem:[%s421_s26] sm:$0xff]  ;;  %v428_v3 = vld [vmem:[%s421_s26 + $0x8] sm:$0xff]  ;;  %s3951_s26 = smov 112  }
  0x1c   : > { %v429_v4 = vpack.c.bf16 %v428_v3, %v427_v2 }
  0x1e   : > { %2781 = vmatmul.mubr.msk.bf16.vlgmr.msra.gmra.mrb[0].mxu0 %vm444_vm1, %v429_v4 }
  0x1f   : > { %2788 = vmatprep.mubr.msk.bf16.mxu0 %vm3258_vm0, %v3257_v1  ;;  %2785 = vmatpush3.bf16.msra.mxu0 %v3070_v32 }
  0x20   : > { %2786 = vmatprep.subr.bf16.mxu0 %v3257_v1 }
  0x23   : > { %2787 = vmatpush3.bf16.msra.mxu0 %v3071_v33 }
  0x24   : > { %2792 = vmatprep.subr.bf16.mxu0 %v3257_v1 }
  0xf1   : > { %v482_v11 = vpop.f32.mrb[0].mxu0 }
  0xf2   : > { %v483_v12 = vadd.f32 %v482_v11, %v437_v9  ;;  %v2782_v13 = vpop.f32.mrb[1].mxu0 }
  0xf3   : > { %v485_v15 = vpop.f32.mrb[2].mxu0 }
  0xf4   : > { %v3423_v16 = vadd.f32 %v483_v12, %v432_v10  ;;  %v486_v17 = vadd.f32 %v485_v15, %v437_v9  ;;  %v2783_v18 = vpop.f32.mrb[3].mxu0 }
  0xf6   : > { %v3425_v19 = vadd.f32 %v486_v17, %v433_v14  ;;  %v493_v20 = vsel %vm492_vm2, %v3423_v16, 0.0 }
  0xf7   : > { %494 = vadd.xlane.f32.xlu0 %v493_v20 }
  0xf8   : > { %v496_v21 = vsel %vm492_vm2, %v3425_v19, 0.0 }
  0xfb   : > { %497 = vadd.xlane.f32.xlu0 %v496_v21 }
 0x184   : > { %v495_v22 = vpop.xlane.xlu0 %494 }
 0x185   : > { %v500_v23 = vmul.f32 0.03125, %v495_v22 }
 0x187   : > { %v502_v24 = vsub.f32 %v3423_v16, %v500_v23 }
 0x188   : > { %v498_v25 = vpop.xlane.xlu0 %497 }
 0x189   : > { %v501_v26 = vmul.f32 0.03125, %v498_v25  ;;  %v504_v27 = vmul.f32 %v502_v24, %v502_v24 }
 0x18b   : > { %v503_v28 = vsub.f32 %v3425_v19, %v501_v26  ;;  %v506_v29 = vsel %vm492_vm2, %v504_v27, 0.0 }
 0x18c   : > { %507 = vadd.xlane.f32.xlu1 %v506_v29 }
 0x18d   : > { %v505_v30 = vmul.f32 %v503_v28, %v503_v28 }
 0x18f   : > { %v509_v31 = vsel %vm492_vm2, %v505_v30, 0.0 }
 0x190   : > { %510 = vadd.xlane.f32.xlu1 %v509_v31 }
 0x219   : > { %v508_v34 = vpop.xlane.xlu1 %507 }
 0x21a   : > { %v512_v35 = vmul.f32 0.03125, %v508_v34 }
 0x21c   : > { %v514_v36 = vadd.f32 1e-05, %v512_v35 }
 0x21d   : > { %v511_v37 = vpop.xlane.xlu1 %510 }
 0x21e   : > { %3102 = vrsqrt.f32 %v514_v36  ;;  %v513_v38 = vmul.f32 0.03125, %v511_v37 }
 0x220   : > { %v515_v39 = vadd.f32 1e-05, %v513_v38 }
 0x222   : > { %3104 = vrsqrt.f32 %v515_v39 }
 0x228   : > { %v3103_v41 = vpop.eup %3102 }
 0x229   : > { %v518_v43 = vmul.f32 %v3103_v41, %v502_v24 }
 0x22b   : > { %v524_v46 = vmul.f32 %v523_v42, %v518_v43 }
 0x22c   : > { %v3105_v45 = vpop.eup %3104 }
 0x22d   : > { %v519_v47 = vmul.f32 %v3105_v45, %v503_v28  ;;  %v530_v50 = vadd.f32 %v529_v48, %v524_v46 }
 0x22f   : > { %v525_v49 = vmul.f32 %v523_v42, %v519_v47 }
 0x231   : > { %v531_v51 = vadd.f32 %v529_v48, %v525_v49 }
 0x233   : > { %v532_v52 = vpack.c.bf16 %v531_v51, %v530_v50 }
 0x235   : > { %2789 = vmatmul.mubr.msk.bf16.vlgmr.msra.gmra.mrb[4].mxu0 %vm492_vm2, %v532_v52 }
 0x236   : > { %2794 = vmatprep.mubr.msk.bf16.mxu0 %vm3258_vm0, %v3257_v1 }
 0x308   : > { %v590_v55 = vpop.f32.mrb[4].mxu0 }
 0x309   : > { %v2790_v56 = vpop.f32.mrb[5].mxu0  ;;  %v591_v58 = vadd.f32 %v590_v55, %v540_v54 }
 0x30a   : > { %v593_v57 = vpop.f32.mrb[6].mxu0 }
 0x30b   : > { %v594_v59 = vadd.f32 %v593_v57, %v540_v54  ;;  %v2791_v60 = vpop.f32.mrb[7].mxu0 }
 0x30d   : > { %v3461_v61 = vpack.c.bf16 %v594_v59, %v591_v58 }
 0x30f   : > { %732 = vrot.lane.b32.xlu1 %v3461_v61, %s3259_s18  ;;  %600 = vrot.lane.b32.xlu0 %v3461_v61, %s3260_s19 }
 0x313   : > { %730 = vrot.lane.b32.xlu1 %v3461_v61, %s3961_s20  ;;  %855 = vrot.lane.b32.xlu0 %v3461_v61, %s3951_s26  ;;  %s424_s26 = scalar_lea.vmem %s3938_s1, %s3396_s17  ;;  %s3955_s17 = smov 64  }
 0x314   : > { %v3502_v12 = vld [vmem:[%s424_s26] ss:$0 sm:$0xff]  ;;  %s3954_s26 = smov 48   ;;  %s3973_s20 = smov 56  }
 0x317   : > { %857 = vrot.lane.b32.xlu1 %v3461_v61, %s3960_s28  ;;  %980 = vrot.lane.b32.xlu0 %v3461_v61, %s3950_s29  ;;  %s3952_s29 = smov 40   ;;  %s3971_s28 = smov 104  }
 0x31b   : > { %982 = vrot.lane.b32.xlu1 %v3461_v61, %s3956_s15  ;;  %s3967_s15 = smov 80  }
 0x381   : > { %v601_v62 = vpop.permute.xlu0 %600  ;;  %v733_v0 = vpop.permute.xlu1 %732 }
 0x382   : > { %v607_v63 = vsel %vm602_vm3, %v601_v62, 0  ;;  %v738_v3 = vsel %vm602_vm3, %v733_v0, 0 }
 0x383   : > { %2793 = vmatpush3.bf16.xpose.msra.mxu0 %v607_v63 }
 0x384   : > { %2804 = vmatprep.subr.bf16.mxu0 %v3257_v1 }
 0x385   : > { %v731_v2 = vpop.permute.xlu1 %730  ;;  %v856_v9 = vpop.permute.xlu0 %855 }
 0x389   : > { %v858_v4 = vpop.permute.xlu1 %857  ;;  %v981_v11 = vpop.permute.xlu0 %980 }
 0x38a   : > { %2795 = vmatmul.mubr.msk.bf16.vlgmr.msra.gmra.mrb[8].mxu0 %vm602_vm3, %v3461_v61  ;;  %v863_v5 = vsel %vm602_vm3, %v858_v4, 0 }
 0x38b   : > { %2805 = vmatpush3.bf16.xpose.msra.mxu0 %v738_v3  ;;  %2806 = vmatprep.mubr.msk.bf16.mxu0 %vm3258_vm0, %v3257_v1 }
 0x38c   : > { %2816 = vmatprep.subr.bf16.mxu0 %v3257_v1 }
 0x38d   : > { %v983_v8 = vpop.permute.xlu1 %982 }
 0x38e   : > { %v988_v10 = vsel %vm602_vm3, %v983_v8, 0 }
 0x392   : > { %2807 = vmatmul.mubr.msk.bf16.vlgmr.msra.gmra.mrb[12].mxu0 %vm602_vm3, %v731_v2 }
 0x393   : > { %2817 = vmatpush3.bf16.xpose.msra.mxu0 %v863_v5  ;;  %2818 = vmatprep.mubr.msk.bf16.mxu0 %vm3258_vm0, %v3257_v1 }
 0x394   : > { %2828 = vmatprep.subr.bf16.mxu0 %v3257_v1 }
 0x39a   : > { %2819 = vmatmul.mubr.msk.bf16.vlgmr.msra.gmra.mrb[16].mxu0 %vm602_vm3, %v856_v9 }
 0x39b   : > { %2829 = vmatpush3.bf16.xpose.msra.mxu0 %v988_v10  ;;  %2830 = vmatprep.mubr.msk.bf16.mxu0 %vm3258_vm0, %v3257_v1 }
 0x39c   : > { %2840 = vmatprep.subr.bf16.mxu0 %v3257_v1 }
 0x3a2   : > { %2831 = vmatmul.mubr.msk.bf16.vlgmr.msra.gmra.mrb[20].mxu0 %vm602_vm3, %v981_v11 }
 0x3a3   : > { %2844 = vmatprep.mubr.msk.bf16.mxu0 %vm3258_vm0, %v3257_v1 }
 0x45d   : > { %v643_v13 = vpop.f32.mrb[8].mxu0 }
 0x45e   : > { %v650_v14 = vmul.f32 0.35355338, %v643_v13  ;;  %v2796_v15 = vpop.f32.mrb[9].mxu0 }
 0x45f   : > { %v646_v17 = vpop.f32.mrb[10].mxu0 }
 0x460   : > { %v651_v18 = vmul.f32 0.35355338, %v646_v17  ;;  %v2797_v20 = vpop.f32.mrb[11].mxu0  ;;  %v658_v21 = vadd.f32 %v3502_v12, %v650_v14 }
 0x462   : > { %v660_v22 = vsel %vm444_vm1, %v658_v21, -inf  ;;  %v659_v23 = vadd.f32 %v3502_v12, %v651_v18 }
 0x463   : > { %661 = vmax.xlane.f32.xlu1 %v660_v22 }
 0x464   : > { %v663_v24 = vsel %vm444_vm1, %v659_v23, -inf }
 0x465   : > { %664 = vmax.xlane.f32.xlu0 %v663_v24  ;;  %v774_v25 = vpop.f32.mrb[12].mxu0 }
 0x466   : > { %v781_v26 = vmul.f32 0.35355338, %v774_v25  ;;  %v2808_v27 = vpop.f32.mrb[13].mxu0 }
 0x467   : > { %v777_v28 = vpop.f32.mrb[14].mxu0 }
 0x468   : > { %v782_v29 = vmul.f32 0.35355338, %v777_v28  ;;  %v2809_v30 = vpop.f32.mrb[15].mxu0  ;;  %v783_v31 = vadd.f32 %v3502_v12, %v781_v26 }
 0x46a   : > { %v785_v32 = vsel %vm444_vm1, %v783_v31, -inf  ;;  %v784_v33 = vadd.f32 %v3502_v12, %v782_v29 }
 0x46b   : > { %786 = vmax.xlane.f32.xlu0 %v785_v32 }
 0x46c   : > { %v788_v37 = vsel %vm444_vm1, %v784_v33, -inf }
 0x46d   : > { %v899_v34 = vpop.f32.mrb[16].mxu0 }
 0x46e   : > { %v906_v35 = vmul.f32 0.35355338, %v899_v34  ;;  %v2820_v36 = vpop.f32.mrb[17].mxu0 }
 0x46f   : > { %789 = vmax.xlane.f32.xlu0 %v788_v37  ;;  %v902_v38 = vpop.f32.mrb[18].mxu0 }
 0x470   : > { %v907_v39 = vmul.f32 0.35355338, %v902_v38  ;;  %v2821_v41 = vpop.f32.mrb[19].mxu0  ;;  %v908_v42 = vadd.f32 %v3502_v12, %v906_v35 }
 0x472   : > { %v910_v43 = vsel %vm444_vm1, %v908_v42, -inf  ;;  %v909_v45 = vadd.f32 %v3502_v12, %v907_v39 }
 0x473   : > { %911 = vmax.xlane.f32.xlu1 %v910_v43 }
 0x474   : > { %v913_v46 = vsel %vm444_vm1, %v909_v45, -inf }
 0x475   : > { %914 = vmax.xlane.f32.xlu0 %v913_v46  ;;  %v1024_v47 = vpop.f32.mrb[20].mxu0 }
 0x476   : > { %v1031_v48 = vmul.f32 0.35355338, %v1024_v47  ;;  %v2832_v49 = vpop.f32.mrb[21].mxu0 }
 0x477   : > { %v1027_v50 = vpop.f32.mrb[22].mxu0 }
 0x478   : > { %v1032_v51 = vmul.f32 0.35355338, %v1027_v50  ;;  %v2833_v52 = vpop.f32.mrb[23].mxu0  ;;  %v1033_v54 = vadd.f32 %v3502_v12, %v1031_v48 }
 0x47a   : > { %v1035_v55 = vsel %vm444_vm1, %v1033_v54, -inf  ;;  %v1034_v56 = vadd.f32 %v3502_v12, %v1032_v51 }
 0x47b   : > { %1036 = vmax.xlane.f32.xlu1 %v1035_v55 }
 0x47c   : > { %v1038_v57 = vsel %vm444_vm1, %v1034_v56, -inf }
 0x47d   : > { %1039 = vmax.xlane.f32.xlu0 %v1038_v57 }
 0x48c   : > { %683 = vrot.lane.b32.xlu1 %v3461_v61, %s3955_s17  ;;  %s3968_s17 = smov 72  }
 0x4f0   : > { %v662_v58 = vpop.xlane.xlu1 %661 }
 0x4f1   : > { %v666_v59 = vsub.f32 %v658_v21, %v662_v58 }
 0x4f2   : > { %v665_v60 = vpop.xlane.xlu0 %664 }
 0x4f3   : > { %v668_v62 = vmul.f32 1.442695, %v666_v59  ;;  %v667_v63 = vsub.f32 %v659_v23, %v665_v60 }
 0x4f5   : > { %3106 = vpow2.f32 %v668_v62  ;;  %v670_v0 = vmul.f32 1.442695, %v667_v63 }
 0x4f7   : > { %3108 = vpow2.f32 %v670_v0 }
 0x4f8   : > { %v787_v2 = vpop.xlane.xlu0 %786 }
 0x4f9   : > { %v791_v3 = vsub.f32 %v783_v31, %v787_v2 }
 0x4fb   : > { %v793_v4 = vmul.f32 1.442695, %v791_v3 }
 0x4fc   : > { %v790_v5 = vpop.xlane.xlu0 %789 }
 0x4fd   : > { %3110 = vpow2.f32 %v793_v4  ;;  %v792_v8 = vsub.f32 %v784_v33, %v790_v5 }
 0x4ff   : > { %v3107_v9 = vpop.eup %3106  ;;  %v795_v10 = vmul.f32 1.442695, %v792_v8 }
 0x500   : > { %v912_v11 = vpop.xlane.xlu1 %911  ;;  %v672_v13 = vsel %vm444_vm1, %v3107_v9, 0.0 }
 0x501   : > { %v3109_v14 = vpop.eup %3108  ;;  %3112 = vpow2.f32 %v795_v10  ;;  %v916_v15 = vsub.f32 %v908_v42, %v912_v11  ;;  %673 = vadd.xlane.f32.xlu1 %v672_v13 }
 0x502   : > { %v915_v17 = vpop.xlane.xlu0 %914  ;;  %v675_v18 = vsel %vm444_vm1, %v3109_v14, 0.0 }
 0x503   : > { %v918_v20 = vmul.f32 1.442695, %v916_v15  ;;  %v917_v21 = vsub.f32 %v909_v45, %v915_v17  ;;  %676 = vadd.xlane.f32.xlu0 %v675_v18 }
 0x505   : > { %3114 = vpow2.f32 %v918_v20  ;;  %v920_v22 = vmul.f32 1.442695, %v917_v21 }
 0x507   : > { %v3111_v23 = vpop.eup %3110  ;;  %3116 = vpow2.f32 %v920_v22 }
 0x508   : > { %v1037_v24 = vpop.xlane.xlu1 %1036  ;;  %v797_v25 = vsel %vm444_vm1, %v3111_v23, 0.0 }
 0x509   : > { %v1041_v26 = vsub.f32 %v1033_v54, %v1037_v24  ;;  %798 = vadd.xlane.f32.xlu1 %v797_v25  ;;  %v3072_v25 = vld [vmem:[%s3944_s7] sm:$0xff]  }
 0x50a   : > { %v1040_v27 = vpop.xlane.xlu0 %1039  ;;  %2841 = vmatpush3.bf16.msra.mxu0 %v3072_v25 }
 0x50b   : > { %v3113_v28 = vpop.eup %3112  ;;  %v1043_v29 = vmul.f32 1.442695, %v1041_v26  ;;  %v1042_v30 = vsub.f32 %v1034_v56, %v1040_v27  ;;  %2842 = vmatprep.subr.bf16.mxu0 %v3257_v1 }
 0x50c   : > { %v684_v31 = vpop.permute.xlu1 %683  ;;  %v800_v32 = vsel %vm444_vm1, %v3113_v28, 0.0 }
 0x50d   : > { %3118 = vpow2.f32 %v1043_v29  ;;  %v1045_v33 = vmul.f32 1.442695, %v1042_v30  ;;  %2799 = vmatpush3.bf16.msra.mxu1 %v684_v31  ;;  %801 = vadd.xlane.f32.xlu0 %v800_v32  ;;  %v3073_v30 = vld [vmem:[%s3944_s7 + $0x8] sm:$0xff]  }
 0x50e   : > { %2810 = vmatprep.subr.bf16.mxu1 %v3257_v1  ;;  %2843 = vmatpush3.bf16.msra.mxu0 %v3073_v30 }
 0x50f   : > { %v3115_v34 = vpop.eup %3114  ;;  %3120 = vpow2.f32 %v1045_v33  ;;  %2856 = vmatprep.subr.bf16.mxu0 %v3257_v1 }
 0x510   : > { %v922_v35 = vsel %vm444_vm1, %v3115_v34, 0.0 }
 0x511   : > { %v3117_v36 = vpop.eup %3116  ;;  %923 = vadd.xlane.f32.xlu1 %v922_v35 }
 0x512   : > { %v925_v37 = vsel %vm444_vm1, %v3117_v36, 0.0 }
 0x513   : > { %926 = vadd.xlane.f32.xlu0 %v925_v37 }
 0x517   : > { %v3119_v38 = vpop.eup %3118 }
 0x518   : > { %v1047_v39 = vsel %vm444_vm1, %v3119_v38, 0.0 }
 0x519   : > { %v3121_v41 = vpop.eup %3120  ;;  %1048 = vadd.xlane.f32.xlu1 %v1047_v39 }
 0x51a   : > { %v1050_v42 = vsel %vm444_vm1, %v3121_v41, 0.0 }
 0x51b   : > { %1051 = vadd.xlane.f32.xlu0 %v1050_v42 }
 0x52a   : > { %933 = vrot.lane.b32.xlu1 %v3461_v61, %s3954_s26  ;;  %s3959_s26 = smov 8  }
 0x52e   : > { %1058 = vrot.lane.b32.xlu1 %v3461_v61, %s3952_s29  ;;  %s3958_s29 = smov 16  }
 0x531   : > { %808 = vrot.lane.b32.xlu0 %v3461_v61, %s3953_s16  ;;  %s3957_s16 = smov 24  }
 0x58e   : > { %v674_v43 = vpop.xlane.xlu1 %673 }
 0x58f   : > { %3122 = vrcp.f32 %v674_v43 }
 0x590   : > { %v677_v45 = vpop.xlane.xlu0 %676 }
 0x591   : > { %3124 = vrcp.f32 %v677_v45 }
 0x596   : > { %v799_v49 = vpop.xlane.xlu1 %798 }
 0x599   : > { %v3123_v46 = vpop.eup %3122 }
 0x59a   : > { %v802_v47 = vpop.xlane.xlu0 %801  ;;  %v680_v50 = vmul.f32 %v3123_v46, %v3107_v9 }
 0x59b   : > { %v3125_v48 = vpop.eup %3124  ;;  %3126 = vrcp.f32 %v802_v47 }
 0x59c   : > { %v681_v51 = vmul.f32 %v3125_v48, %v3109_v14  ;;  %3128 = vrcp.f32 %v799_v49 }
 0x59e   : > { %v682_v52 = vpack.c.bf16 %v681_v51, %v680_v50  ;;  %v924_v61 = vpop.xlane.xlu1 %923 }
 0x5a0   : > { %2801 = vmatmul.mubr.msk.bf16.vlgmr.msra.gmra.mrb[0].mxu1 %vm444_vm1, %v682_v52  ;;  %v927_v54 = vpop.xlane.xlu0 %926 }
 0x5a1   : > { %2812 = vmatprep.mubr.msk.bf16.mxu1 %vm3258_vm0, %v3257_v1  ;;  %3130 = vrcp.f32 %v927_v54 }
 0x5a2   : > { %3132 = vrcp.f32 %v924_v61 }
 0x5a5   : > { %v3127_v55 = vpop.eup %3126 }
 0x5a6   : > { %v3129_v57 = vpop.eup %3128  ;;  %v806_v58 = vmul.f32 %v3127_v55, %v3113_v28  ;;  %v1049_v59 = vpop.xlane.xlu1 %1048 }
 0x5a7   : > { %v805_v60 = vmul.f32 %v3129_v57, %v3111_v23  ;;  %v1201_v57 = vsub.s32 5, %v3408_v6 }
 0x5a8   : > { %v1052_v56 = vpop.xlane.xlu0 %1051 }
 0x5a9   : > { %3134 = vrcp.f32 %v1052_v56  ;;  %v807_v63 = vpack.c.bf16 %v806_v58, %v805_v60  ;;  %v1202_v58 = vrot.slane %v3446_v40, %v1201_v57 }
 0x5aa   : > { %3136 = vrcp.f32 %v1049_v59  ;;  %v934_v2 = vpop.permute.xlu1 %933 }
 0x5ab   : > { %v3131_v0 = vpop.eup %3130 }
 0x5ac   : > { %v809_v62 = vpop.permute.xlu0 %808  ;;  %v3133_v3 = vpop.eup %3132  ;;  %v931_v4 = vmul.f32 %v3131_v0, %v3117_v36 }
 0x5ad   : > { %2811 = vmatpush3.bf16.msra.mxu1 %v809_v62  ;;  %v930_v5 = vmul.f32 %v3133_v3, %v3115_v34 }
 0x5ae   : > { %2822 = vmatprep.subr.bf16.mxu1 %v3257_v1  ;;  %v1059_v10 = vpop.permute.xlu1 %1058 }
 0x5af   : > { %v932_v8 = vpack.c.bf16 %v931_v4, %v930_v5 }
 0x5b0   : > { %2813 = vmatmul.mubr.msk.bf16.vlgmr.msra.gmra.mrb[4].mxu1 %vm444_vm1, %v807_v63 }
 0x5b1   : > { %2823 = vmatpush3.bf16.msra.mxu1 %v934_v2  ;;  %2824 = vmatprep.mubr.msk.bf16.mxu1 %vm3258_vm0, %v3257_v1 }
 0x5b2   : > { %2834 = vmatprep.subr.bf16.mxu1 %v3257_v1 }
 0x5b3   : > { %v3135_v9 = vpop.eup %3134 }
 0x5b4   : > { %v3137_v11 = vpop.eup %3136  ;;  %v1056_v13 = vmul.f32 %v3135_v9, %v3121_v41 }
 0x5b5   : > { %v1055_v14 = vmul.f32 %v3137_v11, %v3119_v38 }
 0x5b7   : > { %v1057_v15 = vpack.c.bf16 %v1056_v13, %v1055_v14 }
 0x5b8   : > { %2825 = vmatmul.mubr.msk.bf16.vlgmr.msra.gmra.mrb[8].mxu1 %vm444_vm1, %v932_v8 }
 0x5b9   : > { %2835 = vmatpush3.bf16.msra.mxu1 %v1059_v10  ;;  %2836 = vmatprep.mubr.msk.bf16.mxu1 %vm3258_vm0, %v3257_v1 }
 0x5ba   : > { %2848 = vmatprep.subr.bf16.mxu1 %v3257_v1 }
 0x5c0   : > { %2837 = vmatmul.mubr.msk.bf16.vlgmr.msra.gmra.mrb[12].mxu1 %vm444_vm1, %v1057_v15 }
 0x5c1   : > { %2852 = vmatprep.mubr.msk.bf16.mxu1 %vm3258_vm0, %v3257_v1 }
 0x673   : > { %v723_v17 = vpop.f32.mrb[0].mxu1 }
 0x674   : > { %v2802_v18 = vpop.f32.mrb[1].mxu1 }
 0x675   : > { %v726_v20 = vpop.f32.mrb[2].mxu1 }
 0x676   : > { %v2803_v21 = vpop.f32.mrb[3].mxu1 }
 0x677   : > { %v3075_v21 = vld [vmem:[%s3945_s8 + $0x8] sm:$0xff]  }
 0x683   : > { %v848_v22 = vpop.f32.mrb[4].mxu1 }
 0x684   : > { %v2814_v23 = vpop.f32.mrb[5].mxu1 }
 0x685   : > { %v851_v24 = vpop.f32.mrb[6].mxu1 }
 0x686   : > { %v3039_v26 = vpack.i.bf16 %v851_v24, %v848_v22  ;;  %v2815_v27 = vpop.f32.mrb[7].mxu1 }
 0x688   : > { %3040 = vrot.lane.b32.xlu1 %v3039_v26, %s3959_s26  ;;  %s3972_s26 = smov 48  }
 0x68b   : > { %v973_v28 = vpop.f32.mrb[8].mxu1 }
 0x68c   : > { %v2826_v29 = vpop.f32.mrb[9].mxu1 }
 0x68d   : > { %v976_v31 = vpop.f32.mrb[10].mxu1 }
 0x68e   : > { %v3044_v32 = vpack.i.bf16 %v976_v31, %v973_v28  ;;  %v2827_v33 = vpop.f32.mrb[11].mxu1  ;;  %v1233_v28 = vsub.s32 2, %v3408_v6 }
 0x690   : > { %3045 = vrot.lane.b32.xlu0 %v3044_v32, %s3958_s29  ;;  %v1234_v30 = vrot.slane %v3446_v40, %v1233_v28  ;;  %v1239_v32 = vsub.s32 3, %v3408_v6  ;;  %s3974_s29 = smov 40  }
 0x693   : > { %v1098_v34 = vpop.f32.mrb[12].mxu1 }
 0x694   : > { %v2838_v35 = vpop.f32.mrb[13].mxu1 }
 0x695   : > { %v1101_v36 = vpop.f32.mrb[14].mxu1 }
 0x696   : > { %v3049_v37 = vpack.i.bf16 %v1101_v36, %v1098_v34  ;;  %v2839_v38 = vpop.f32.mrb[15].mxu1  ;;  %v1240_v36 = vrot.slane %v3446_v40, %v1239_v32 }
 0x698   : > { %3050 = vrot.lane.b32.xlu1 %v3049_v37, %s3957_s16  ;;  %s3966_s16 = smov 120  }
 0x6fa   : > { %v3041_v39 = vpop.permute.xlu1 %3040 }
 0x6fb   : > { %v3043_v42 = vunpack.i.h.bf16 %v3041_v39  ;;  %v3042_v43 = vunpack.i.l.bf16 %v3041_v39 }
 0x6fd   : > { %v1130_v48 = vsel %vm602_vm3, %v726_v20, %v3043_v42  ;;  %v1129_v49 = vsel %vm602_vm3, %v723_v17, %v3042_v43  ;;  %v3074_v20 = vld [vmem:[%s3945_s8] sm:$0xff]   ;;  %v3077_v43 = vld [vmem:[%s3946_s9 + $0x8] sm:$0xff]  }
 0x6fe   : > { %2849 = vmatpush3.bf16.msra.mxu1 %v3074_v20  ;;  %v3076_v42 = vld [vmem:[%s3946_s9] sm:$0xff]  }
 0x6ff   : > { %2850 = vmatprep.subr.bf16.mxu1 %v3257_v1 }
 0x702   : > { %v3046_v41 = vpop.permute.xlu0 %3045  ;;  %2851 = vmatpush3.bf16.msra.mxu1 %v3075_v21 }
 0x703   : > { %v3048_v45 = vunpack.i.h.bf16 %v3046_v41  ;;  %v3047_v46 = vunpack.i.l.bf16 %v3046_v41  ;;  %2876 = vmatprep.subr.bf16.mxu1 %v3257_v1 }
 0x705   : > { %v1132_v52 = vsel %vm444_vm1, %v1130_v48, %v3048_v45  ;;  %v1131_v54 = vsel %vm444_vm1, %v1129_v49, %v3047_v46  ;;  %v3078_v45 = vld [vmem:[%s3946_s9 + $0x10] sm:$0xff]   ;;  %v3079_v46 = vld [vmem:[%s3946_s9 + $0x18] sm:$0xff]   ;;  %v3081_v48 = vld [vmem:[%s3946_s9 + $0x28] sm:$0xff]  }
 0x706   : > { %v3082_v49 = vld [vmem:[%s3946_s9 + $0x30] sm:$0xff]  }
 0x70a   : > { %v3051_v47 = vpop.permute.xlu1 %3050 }
 0x70b   : > { %v3053_v50 = vunpack.i.h.bf16 %v3051_v47  ;;  %v3052_v51 = vunpack.i.l.bf16 %v3051_v47  ;;  %v3080_v47 = vld [vmem:[%s3946_s9 + $0x20] sm:$0xff]  }
 0x70d   : > { %v1135_v61 = vsel %vm1133_vm4, %v1132_v52, %v3053_v50  ;;  %v1134_v55 = vsel %vm1133_vm4, %v1131_v54, %v3052_v51  ;;  %v3083_v50 = vld [vmem:[%s3946_s9 + $0x38] sm:$0xff]   ;;  %v1250_v51 = vsub.s32 6, %v3408_v6 }
 0x70e   : > { %v1136_v56 = vpack.c.bf16 %v1135_v61, %v1134_v55 }
 0x70f   : > { %v1251_v52 = vrot.slane %v3446_v40, %v1250_v51 }
 0x710   : > { %2845 = vmatmul.mubr.msk.bf16.vlgmr.msra.gmra.mrb[24].mxu0 %vm492_vm2, %v1136_v56 }
 0x711   : > { %2872 = vmatprep.mubr.msk.bf16.mxu0 %vm3258_vm0, %v3257_v1  ;;  %2857 = vmatpush3.bf16.msra.mxu0 %v3076_v42 }
 0x712   : > { %2858 = vmatprep.subr.bf16.mxu0 %v3257_v1 }
 0x715   : > { %2859 = vmatpush3.bf16.msra.mxu0 %v3077_v43 }
 0x716   : > { %2860 = vmatprep.subr.bf16.mxu0 %v3257_v1 }
 0x719   : > { %2861 = vmatpush3.bf16.msra.mxu0 %v3078_v45  ;;  %v3084_v45 = vld [vmem:[%s3943_s6 + $0x10] sm:$0xff]  }
 0x71a   : > { %2862 = vmatprep.subr.bf16.mxu0 %v3257_v1 }
 0x71d   : > { %2863 = vmatpush3.bf16.msra.mxu0 %v3079_v46  ;;  %v3085_v46 = vld [vmem:[%s3943_s6 + $0x18] sm:$0xff]  }
 0x71e   : > { %2864 = vmatprep.subr.bf16.mxu0 %v3257_v1 }
 0x721   : > { %2865 = vmatpush3.bf16.msra.mxu0 %v3080_v47 }
 0x722   : > { %2866 = vmatprep.subr.bf16.mxu0 %v3257_v1 }
 0x725   : > { %2867 = vmatpush3.bf16.msra.mxu0 %v3081_v48 }
 0x726   : > { %2868 = vmatprep.subr.bf16.mxu0 %v3257_v1 }
 0x729   : > { %2869 = vmatpush3.bf16.msra.mxu0 %v3082_v49 }
 0x72a   : > { %2870 = vmatprep.subr.bf16.mxu0 %v3257_v1 }
 0x72d   : > { %2871 = vmatpush3.bf16.msra.mxu0 %v3083_v50 }
 0x72e   : > { %2902 = vmatprep.subr.bf16.mxu0 %v3257_v1 }
 0x7e3   : > { %v1190_v59 = vpop.f32.mrb[24].mxu0 }
 0x7e4   : > { %v1197_v60 = vadd.f32 %v1190_v59, %v3423_v16  ;;  %v2846_v62 = vpop.f32.mrb[25].mxu0 }
 0x7e5   : > { %v1193_v63 = vpop.f32.mrb[26].mxu0 }
 0x7e6   : > { %v3577_v0 = vadd.f32 %v1202_v58, %v1197_v60  ;;  %v1198_v2 = vadd.f32 %v1193_v63, %v3425_v19  ;;  %v2847_v3 = vpop.f32.mrb[27].mxu0 }
 0x7e8   : > { %v3580_v4 = vadd.f32 %v1202_v58, %v1198_v2  ;;  %v1205_v5 = vsel %vm492_vm2, %v3577_v0, 0.0 }
 0x7e9   : > { %1206 = vadd.xlane.f32.xlu0 %v1205_v5 }
 0x7ea   : > { %v1208_v8 = vsel %vm492_vm2, %v3580_v4, 0.0 }
 0x7eb   : > { %1209 = vadd.xlane.f32.xlu1 %v1208_v8 }
 0x876   : > { %v1207_v9 = vpop.xlane.xlu0 %1206 }
 0x877   : > { %v1211_v10 = vmul.f32 0.03125, %v1207_v9 }
 0x878   : > { %v1210_v16 = vpop.xlane.xlu1 %1209 }
 0x879   : > { %v1213_v11 = vsub.f32 %v3577_v0, %v1211_v10  ;;  %v1212_v13 = vmul.f32 0.03125, %v1210_v16 }
 0x87b   : > { %v1214_v14 = vsub.f32 %v3580_v4, %v1212_v13  ;;  %v1215_v19 = vmul.f32 %v1213_v11, %v1213_v11 }
 0x87d   : > { %v1217_v15 = vsel %vm492_vm2, %v1215_v19, 0.0  ;;  %v1216_v17 = vmul.f32 %v1214_v14, %v1214_v14 }
 0x87e   : > { %1218 = vadd.xlane.f32.xlu0 %v1217_v15 }
 0x87f   : > { %v1220_v18 = vsel %vm492_vm2, %v1216_v17, 0.0 }
 0x882   : > { %1221 = vadd.xlane.f32.xlu0 %v1220_v18 }
 0x90b   : > { %v1219_v22 = vpop.xlane.xlu0 %1218 }
 0x90c   : > { %v1223_v23 = vmul.f32 0.03125, %v1219_v22  ;;  %v1436_v22 = vsub.s32 7, %v3408_v6  ;;  %v3098_v6 = vld [vmem:[%s3947_s10] sm:$0xff]  }
 0x90e   : > { %v1225_v24 = vadd.f32 1e-05, %v1223_v23  ;;  %v1437_v23 = vrot.slane %v3446_v40, %v1436_v22 }
 0x90f   : > { %v1222_v25 = vpop.xlane.xlu0 %1221 }
 0x910   : > { %3138 = vrsqrt.f32 %v1225_v24  ;;  %v1224_v26 = vmul.f32 0.03125, %v1222_v25 }
 0x912   : > { %v1226_v27 = vadd.f32 1e-05, %v1224_v26 }
 0x914   : > { %3140 = vrsqrt.f32 %v1226_v27 }
 0x91a   : > { %v3139_v29 = vpop.eup %3138 }
 0x91b   : > { %v1229_v31 = vmul.f32 %v3139_v29, %v1213_v11 }
 0x91d   : > { %v1235_v34 = vmul.f32 %v1234_v30, %v1229_v31 }
 0x91e   : > { %v3141_v33 = vpop.eup %3140 }
 0x91f   : > { %v1230_v35 = vmul.f32 %v3141_v33, %v1214_v14  ;;  %v1241_v38 = vadd.f32 %v1240_v36, %v1235_v34 }
 0x921   : > { %v1236_v37 = vmul.f32 %v1234_v30, %v1230_v35 }
 0x923   : > { %v1242_v39 = vadd.f32 %v1240_v36, %v1236_v37 }
 0x925   : > { %v1243_v41 = vpack.c.bf16 %v1242_v39, %v1241_v38 }
 0x927   : > { %2853 = vmatmul.mubr.msk.bf16.vlgmr.msra.gmra.mrb[16].mxu1 %vm492_vm2, %v1243_v41 }
 0x928   : > { %2880 = vmatprep.mubr.msk.bf16.mxu1 %vm3258_vm0, %v3257_v1  ;;  %2877 = vmatpush3.bf16.msra.mxu1 %v3084_v45 }
 0x929   : > { %2878 = vmatprep.subr.bf16.mxu1 %v3257_v1 }
 0x92c   : > { %2879 = vmatpush3.bf16.msra.mxu1 %v3085_v46 }
 0x92d   : > { %2884 = vmatprep.subr.bf16.mxu1 %v3257_v1 }
 0x9fa   : > { %v1301_v54 = vpop.f32.mrb[16].mxu1 }
 0x9fb   : > { %v1302_v61 = vadd.f32 %v1301_v54, %v1251_v52  ;;  %v2854_v55 = vpop.f32.mrb[17].mxu1 }
 0x9fc   : > { %v1304_v56 = vpop.f32.mrb[18].mxu1 }
 0x9fd   : > { %v1308_v58 = vmul.f32 %v1302_v61, %v1302_v61  ;;  %v1305_v59 = vadd.f32 %v1304_v56, %v1251_v52  ;;  %v2855_v60 = vpop.f32.mrb[19].mxu1 }
 0x9ff   : > { %v1310_v62 = vmul.f32 %v1308_v58, %v1302_v61  ;;  %v1309_v63 = vmul.f32 %v1305_v59, %v1305_v59 }
 0xa01   : > { %v1312_v2 = vmul.f32 0.044715, %v1310_v62  ;;  %v1311_v3 = vmul.f32 %v1309_v63, %v1305_v59 }
 0xa03   : > { %v1314_v5 = vadd.f32 %v1312_v2, %v1302_v61  ;;  %v1313_v8 = vmul.f32 0.044715, %v1311_v3 }
 0xa05   : > { %v1316_v9 = vmul.f32 0.7978846, %v1314_v5  ;;  %v1315_v10 = vadd.f32 %v1313_v8, %v1305_v59 }
 0xa07   : > { %3142 = vtanh.f32 %v1316_v9  ;;  %v1317_v16 = vmul.f32 0.7978846, %v1315_v10 }
 0xa09   : > { %3144 = vtanh.f32 %v1317_v16 }
 0xa11   : > { %v3143_v11 = vpop.eup %3142 }
 0xa12   : > { %v1320_v13 = vadd.f32 1.0, %v3143_v11 }
 0xa13   : > { %v3145_v14 = vpop.eup %3144 }
 0xa14   : > { %v1322_v19 = vmul.f32 0.5, %v1320_v13  ;;  %v1321_v15 = vadd.f32 1.0, %v3145_v14 }
 0xa16   : > { %v1323_v17 = vmul.f32 0.5, %v1321_v15  ;;  %v1324_v18 = vmul.f32 %v1322_v19, %v1302_v61  ;;  %v3676_v61 = vld [vmem:[%s3942_s5 + $0x8] sm:$0xff] }
 0xa17   : > { %v1471_v55 = vrot.slane %v3676_v61, %v3411_v7  ;;  %v1477_v63 = vrot.slane %v3676_v61, %v528_v44  ;;  %v1489_v7 = vrot.slane %v3676_v61, %v539_v53 }
 0xa18   : > { %v1325_v20 = vmul.f32 %v1323_v17, %v1305_v59 }
 0xa1a   : > { %v1326_v21 = vpack.c.bf16 %v1325_v20, %v1324_v18 }
 0xa1c   : > { %2873 = vmatmul.mubr.bf16.vlgmr.msra.gmra.mrb[28].mxu0 %v1326_v21 }
 0xa1d   : > { %2904 = vmatprep.mubr.msk.bf16.mxu0 %vm3258_vm0, %v3257_v1 }
 0xaef   : > { %v1425_v24 = vpop.f32.mrb[28].mxu0 }
 0xaf0   : > { %v1432_v25 = vadd.f32 %v1425_v24, %v3577_v0  ;;  %v2874_v26 = vpop.f32.mrb[29].mxu0 }
 0xaf1   : > { %v1428_v27 = vpop.f32.mrb[30].mxu0 }
 0xaf2   : > { %v3652_v29 = vadd.f32 %v1437_v23, %v1432_v25  ;;  %v1433_v30 = vadd.f32 %v1428_v27, %v3580_v4  ;;  %v2875_v31 = vpop.f32.mrb[31].mxu0 }
 0xaf4   : > { %v3655_v33 = vadd.f32 %v1437_v23, %v1433_v30  ;;  %v1442_v34 = vsel %vm492_vm2, %v3652_v29, 0.0 }
 0xaf5   : > { %1443 = vadd.xlane.f32.xlu0 %v1442_v34 }
 0xaf6   : > { %v1445_v35 = vsel %vm492_vm2, %v3655_v33, 0.0 }
 0xaf7   : > { %1446 = vadd.xlane.f32.xlu1 %v1445_v35 }
 0xb82   : > { %v1444_v40 = vpop.xlane.xlu0 %1443 }
 0xb83   : > { %v1448_v36 = vmul.f32 0.03125, %v1444_v40 }
 0xb84   : > { %v1447_v0 = vpop.xlane.xlu1 %1446 }
 0xb85   : > { %v1450_v37 = vsub.f32 %v3652_v29, %v1448_v36  ;;  %v1449_v38 = vmul.f32 0.03125, %v1447_v0 }
 0xb87   : > { %v1451_v39 = vsub.f32 %v3655_v33, %v1449_v38  ;;  %v1452_v4 = vmul.f32 %v1450_v37, %v1450_v37 }
 0xb89   : > { %v1454_v41 = vsel %vm492_vm2, %v1452_v4, 0.0  ;;  %v1453_v42 = vmul.f32 %v1451_v39, %v1451_v39 }
 0xb8a   : > { %1455 = vadd.xlane.f32.xlu0 %v1454_v41 }
 0xb8b   : > { %v1457_v43 = vsel %vm492_vm2, %v1453_v42, 0.0 }
 0xb8c   : > { %1458 = vadd.xlane.f32.xlu1 %v1457_v43 }
 0xc17   : > { %v1456_v47 = vpop.xlane.xlu0 %1455 }
 0xc18   : > { %v1460_v48 = vmul.f32 0.03125, %v1456_v47 }
 0xc19   : > { %v1459_v49 = vpop.xlane.xlu1 %1458 }
 0xc1a   : > { %v1462_v50 = vadd.f32 1e-05, %v1460_v48  ;;  %v1461_v52 = vmul.f32 0.03125, %v1459_v49 }
 0xc1c   : > { %3146 = vrsqrt.f32 %v1462_v50  ;;  %v1463_v54 = vadd.f32 1e-05, %v1461_v52 }
 0xc1e   : > { %3148 = vrsqrt.f32 %v1463_v54 }
 0xc26   : > { %v3147_v56 = vpop.eup %3146 }
 0xc27   : > { %v1466_v58 = vmul.f32 %v3147_v56, %v1450_v37 }
 0xc28   : > { %v3149_v59 = vpop.eup %3148 }
 0xc29   : > { %v1472_v60 = vmul.f32 %v1471_v55, %v1466_v58  ;;  %v1467_v62 = vmul.f32 %v3149_v59, %v1451_v39 }
 0xc2b   : > { %v1473_v2 = vmul.f32 %v1471_v55, %v1467_v62  ;;  %v1478_v3 = vadd.f32 %v1477_v63, %v1472_v60 }
 0xc2d   : > { %v1479_v5 = vadd.f32 %v1477_v63, %v1473_v2 }
 0xc2f   : > { %v1480_v8 = vpack.c.bf16 %v1479_v5, %v1478_v3 }
 0xc31   : > { %2881 = vmatmul.mubr.msk.bf16.vlgmr.msra.gmra.mrb[20].mxu1 %vm492_vm2, %v1480_v8 }
 0xc32   : > { %2886 = vmatprep.mubr.msk.bf16.mxu1 %vm3258_vm0, %v3257_v1 }
 0xd04   : > { %v1539_v9 = vpop.f32.mrb[20].mxu1 }
 0xd05   : > { %v2882_v10 = vpop.f32.mrb[21].mxu1  ;;  %v1540_v11 = vadd.f32 %v1539_v9, %v1489_v7 }
 0xd06   : > { %v1542_v16 = vpop.f32.mrb[22].mxu1 }
 0xd07   : > { %v1543_v13 = vadd.f32 %v1542_v16, %v1489_v7  ;;  %v2883_v14 = vpop.f32.mrb[23].mxu1 }
 0xd09   : > { %v3689_v44 = vpack.c.bf16 %v1543_v13, %v1540_v11 }
 0xd0b   : > { %1548 = vrot.lane.b32.xlu0 %v3689_v44, %s3260_s19  ;;  %s3970_s19 = smov 112  }
 0xd0f   : > { %1673 = vrot.lane.b32.xlu0 %v3689_v44, %s3259_s18  ;;  %s3969_s18 = smov 64  }
 0xd13   : > { %1671 = vrot.lane.b32.xlu0 %v3689_v44, %s3966_s16  ;;  %s3273_s16 = smov [#allocation2]  }
 0xd14   : > { %s3197_s0 = sshll.u32 %s3273_s16, 4  ;;  %s3198_s0 = int_to_ptr.vmem [resolvable:$false] %s3197_s0 }
 0xd17   : > { %1798 = vrot.lane.b32.xlu0 %v3689_v44, %s3967_s15  ;;  %s415_s15 = sand.u32 1, %s3247_s22  }
 0xd1b   : > { %1923 = vrot.lane.b32.xlu0 %v3689_v44, %s3968_s17  ;;  %s3975_s17 = smov 8  }
 0xd7d   : > { %v1549_v53 = vpop.permute.xlu0 %1548 }
 0xd7e   : > { %v1554_v19 = vsel %vm602_vm3, %v1549_v53, 0 }
 0xd7f   : > { %2885 = vmatpush3.bf16.xpose.msra.mxu1 %v1554_v19 }
 0xd80   : > { %2890 = vmatprep.subr.bf16.mxu1 %v3257_v1 }
 0xd81   : > { %v1674_v45 = vpop.permute.xlu0 %1673 }
 0xd82   : > { %v1679_v52 = vsel %vm602_vm3, %v1674_v45, 0 }
 0xd85   : > { %v1672_v50 = vpop.permute.xlu0 %1671 }
 0xd86   : > { %2887 = vmatmul.mubr.msk.bf16.vlgmr.msra.gmra.mrb[24].mxu1 %vm602_vm3, %v3689_v44 }
 0xd87   : > { %2892 = vmatprep.mubr.msk.bf16.mxu1 %vm3258_vm0, %v3257_v1 }
 0xd89   : > { %v1799_v54 = vpop.permute.xlu0 %1798 }
 0xd8a   : > { %v1804_v55 = vsel %vm602_vm3, %v1799_v54, 0 }
 0xd8d   : > { %v1924_v56 = vpop.permute.xlu0 %1923 }
 0xd8e   : > { %v1929_v59 = vsel %vm602_vm3, %v1924_v56, 0 }
 0xe59   : > { %v1590_v15 = vpop.f32.mrb[24].mxu1 }
 0xe5a   : > { %v1597_v17 = vmul.f32 0.35355338, %v1590_v15  ;;  %v2888_v18 = vpop.f32.mrb[25].mxu1 }
 0xe5b   : > { %v1593_v20 = vpop.f32.mrb[26].mxu1 }
 0xe5c   : > { %v1598_v21 = vmul.f32 0.35355338, %v1593_v20  ;;  %v2889_v23 = vpop.f32.mrb[27].mxu1  ;;  %v1599_v24 = vadd.f32 %v3502_v12, %v1597_v17 }
 0xe5e   : > { %v1601_v25 = vsel %vm444_vm1, %v1599_v24, -inf  ;;  %v1600_v26 = vadd.f32 %v3502_v12, %v1598_v21 }
 0xe5f   : > { %1602 = vmax.xlane.f32.xlu1 %v1601_v25 }
 0xe60   : > { %v1604_v27 = vsel %vm444_vm1, %v1600_v26, -inf }
 0xe63   : > { %1605 = vmax.xlane.f32.xlu1 %v1604_v27 }
 0xeec   : > { %v1603_v30 = vpop.xlane.xlu1 %1602 }
 0xeed   : > { %v1607_v31 = vsub.f32 %v1599_v24, %v1603_v30 }
 0xeef   : > { %v1609_v34 = vmul.f32 1.442695, %v1607_v31 }
 0xef0   : > { %v1606_v35 = vpop.xlane.xlu1 %1605 }
 0xef1   : > { %3150 = vpow2.f32 %v1609_v34  ;;  %v1608_v40 = vsub.f32 %v1600_v26, %v1606_v35 }
 0xef3   : > { %v1611_v36 = vmul.f32 1.442695, %v1608_v40 }
 0xef5   : > { %3152 = vpow2.f32 %v1611_v36 }
 0xefb   : > { %v3151_v0 = vpop.eup %3150 }
 0xefc   : > { %v1613_v37 = vsel %vm444_vm1, %v3151_v0, 0.0 }
 0xefd   : > { %1614 = vadd.xlane.f32.xlu1 %v1613_v37 }
 0xeff   : > { %v3153_v38 = vpop.eup %3152 }
 0xf00   : > { %v1616_v39 = vsel %vm444_vm1, %v3153_v38, 0.0 }
 0xf01   : > { %1617 = vadd.xlane.f32.xlu1 %v1616_v39 }
 0xf12   : > { %1624 = vrot.lane.b32.xlu1 %v3689_v44, %s3969_s18  ;;  %s3976_s18 = smov 16  }
 0xf16   : > { %1796 = vrot.lane.b32.xlu1 %v3689_v44, %s3970_s19 }
 0xf1a   : > { %1921 = vrot.lane.b32.xlu1 %v3689_v44, %s3971_s28  ;;  %s3199_s28 = scalar_lea.vmem %s3198_s0, 32 }
 0xf8a   : > { %v1615_v4 = vpop.xlane.xlu1 %1614 }
 0xf8b   : > { %3154 = vrcp.f32 %v1615_v4 }
 0xf8e   : > { %v1618_v41 = vpop.xlane.xlu1 %1617 }
 0xf8f   : > { %3156 = vrcp.f32 %v1618_v41 }
 0xf92   : > { %v1625_v42 = vpop.permute.xlu1 %1624 }
 0xf93   : > { %2891 = vmatpush3.bf16.msra.mxu1 %v1625_v42 }
 0xf94   : > { %2896 = vmatprep.subr.bf16.mxu1 %v3257_v1 }
 0xf95   : > { %v3155_v43 = vpop.eup %3154 }
 0xf96   : > { %v1621_v47 = vmul.f32 %v3155_v43, %v3151_v0  ;;  %v1797_v58 = vpop.permute.xlu1 %1796 }
 0xf99   : > { %v3157_v46 = vpop.eup %3156 }
 0xf9a   : > { %v1622_v48 = vmul.f32 %v3157_v46, %v3153_v38  ;;  %v1922_v60 = vpop.permute.xlu1 %1921 }
 0xf9c   : > { %v1623_v49 = vpack.c.bf16 %v1622_v48, %v1621_v47 }
 0xf9e   : > { %2893 = vmatmul.mubr.msk.bf16.vlgmr.msra.gmra.mrb[28].mxu1 %vm444_vm1, %v1623_v49 }
 0xf9f   : > { %2897 = vmatpush3.bf16.xpose.msra.mxu1 %v1679_v52  ;;  %2898 = vmatprep.mubr.msk.bf16.mxu1 %vm3258_vm0, %v3257_v1 }
 0xfa0   : > { %2908 = vmatprep.subr.bf16.mxu1 %v3257_v1 }
 0xfa6   : > { %2899 = vmatmul.mubr.msk.bf16.vlgmr.msra.gmra.mrb[32].mxu1 %vm602_vm3, %v1672_v50 }
 0xfa7   : > { %2909 = vmatpush3.bf16.xpose.msra.mxu1 %v1804_v55  ;;  %2910 = vmatprep.mubr.msk.bf16.mxu1 %vm3258_vm0, %v3257_v1 }
 0xfa8   : > { %2920 = vmatprep.subr.bf16.mxu1 %v3257_v1 }
 0xfae   : > { %2911 = vmatmul.mubr.msk.bf16.vlgmr.msra.gmra.mrb[36].mxu1 %vm602_vm3, %v1797_v58 }
 0xfaf   : > { %2921 = vmatpush3.bf16.xpose.msra.mxu1 %v1929_v59  ;;  %2922 = vmatprep.mubr.msk.bf16.mxu1 %vm3258_vm0, %v3257_v1 }
 0xfb0   : > { %2932 = vmatprep.subr.bf16.mxu1 %v3257_v1 }
 0xfb6   : > { %2923 = vmatmul.mubr.msk.bf16.vlgmr.msra.gmra.mrb[40].mxu1 %vm602_vm3, %v1922_v60 }
 0xfb7   : > { %2936 = vmatprep.mubr.msk.bf16.mxu1 %vm3258_vm0, %v3257_v1 }
0x1071   : > { %v3738_v62 = vpop.f32.mrb[28].mxu1 }
0x1072   : > { %v2894_v63 = vpop.f32.mrb[29].mxu1 }
0x1073   : > { %v3740_v2 = vpop.f32.mrb[30].mxu1 }
0x1074   : > { %v2895_v3 = vpop.f32.mrb[31].mxu1 }
0x1079   : > { %v1715_v5 = vpop.f32.mrb[32].mxu1 }
0x107a   : > { %v1722_v8 = vmul.f32 0.35355338, %v1715_v5  ;;  %v2900_v7 = vpop.f32.mrb[33].mxu1 }
0x107b   : > { %v1718_v9 = vpop.f32.mrb[34].mxu1 }
0x107c   : > { %v1723_v10 = vmul.f32 0.35355338, %v1718_v9  ;;  %v2901_v16 = vpop.f32.mrb[35].mxu1  ;;  %v1724_v11 = vadd.f32 %v3502_v12, %v1722_v8 }
0x107e   : > { %v1726_v13 = vsel %vm444_vm1, %v1724_v11, -inf  ;;  %v1725_v14 = vadd.f32 %v3502_v12, %v1723_v10 }
0x107f   : > { %1727 = vmax.xlane.f32.xlu0 %v1726_v13 }
0x1080   : > { %v1729_v53 = vsel %vm444_vm1, %v1725_v14, -inf }
0x1081   : > { %1730 = vmax.xlane.f32.xlu1 %v1729_v53  ;;  %v1840_v19 = vpop.f32.mrb[36].mxu1 }
0x1082   : > { %v1847_v15 = vmul.f32 0.35355338, %v1840_v19  ;;  %v2912_v17 = vpop.f32.mrb[37].mxu1 }
0x1083   : > { %v1843_v18 = vpop.f32.mrb[38].mxu1 }
0x1084   : > { %v1848_v20 = vmul.f32 0.35355338, %v1843_v18  ;;  %v2913_v21 = vpop.f32.mrb[39].mxu1  ;;  %v1849_v23 = vadd.f32 %v3502_v12, %v1847_v15 }
0x1086   : > { %v1851_v24 = vsel %vm444_vm1, %v1849_v23, -inf  ;;  %v1850_v25 = vadd.f32 %v3502_v12, %v1848_v20 }
0x1087   : > { %1852 = vmax.xlane.f32.xlu0 %v1851_v24 }
0x1088   : > { %v1854_v31 = vsel %vm444_vm1, %v1850_v25, -inf }
0x1089   : > { %v1965_v26 = vpop.f32.mrb[40].mxu1 }
0x108a   : > { %v1972_v27 = vmul.f32 0.35355338, %v1965_v26  ;;  %v2924_v30 = vpop.f32.mrb[41].mxu1 }
0x108b   : > { %1855 = vmax.xlane.f32.xlu0 %v1854_v31  ;;  %v1968_v34 = vpop.f32.mrb[42].mxu1 }
0x108c   : > { %v1973_v35 = vmul.f32 0.35355338, %v1968_v34  ;;  %v2925_v40 = vpop.f32.mrb[43].mxu1  ;;  %v1974_v36 = vadd.f32 %v3502_v12, %v1972_v27 }
0x108e   : > { %v1976_v0 = vsel %vm444_vm1, %v1974_v36, -inf  ;;  %v1975_v37 = vadd.f32 %v3502_v12, %v1973_v35 }
0x108f   : > { %1977 = vmax.xlane.f32.xlu0 %v1976_v0 }
0x1090   : > { %v1979_v38 = vsel %vm444_vm1, %v1975_v37, -inf }
0x1091   : > { %1980 = vmax.xlane.f32.xlu1 %v1979_v38 }
0x110c   : > { %v1728_v39 = vpop.xlane.xlu0 %1727 }
0x110d   : > { %v1732_v4 = vsub.f32 %v1724_v11, %v1728_v39 }
0x110e   : > { %v1731_v41 = vpop.xlane.xlu1 %1730 }
0x110f   : > { %v1734_v42 = vmul.f32 1.442695, %v1732_v4  ;;  %v1733_v43 = vsub.f32 %v1725_v14, %v1731_v41 }
0x1111   : > { %3158 = vpow2.f32 %v1734_v42  ;;  %v1736_v45 = vmul.f32 1.442695, %v1733_v43 }
0x1113   : > { %3160 = vpow2.f32 %v1736_v45  ;;  %v3086_v45 = vld [vmem:[%s3944_s7 + $0x10] sm:$0xff]  }
0x1114   : > { %v1853_v46 = vpop.xlane.xlu0 %1852  ;;  %2933 = vmatpush3.bf16.msra.mxu1 %v3086_v45 }
0x1115   : > { %v1857_v47 = vsub.f32 %v1849_v23, %v1853_v46  ;;  %2934 = vmatprep.subr.bf16.mxu1 %v3257_v1 }
0x1117   : > { %v1859_v48 = vmul.f32 1.442695, %v1857_v47 }
0x1118   : > { %v1856_v49 = vpop.xlane.xlu0 %1855 }
0x1119   : > { %3162 = vpow2.f32 %v1859_v48  ;;  %v1858_v50 = vsub.f32 %v1850_v25, %v1856_v49 }
0x111b   : > { %v3159_v52 = vpop.eup %3158  ;;  %v1861_v12 = vmul.f32 1.442695, %v1858_v50 }
0x111c   : > { %v1978_v54 = vpop.xlane.xlu0 %1977  ;;  %v1738_v55 = vsel %vm444_vm1, %v3159_v52, 0.0 }
0x111d   : > { %v3161_v56 = vpop.eup %3160  ;;  %3164 = vpow2.f32 %v1861_v12  ;;  %v1982_v58 = vsub.f32 %v1974_v36, %v1978_v54  ;;  %1739 = vadd.xlane.f32.xlu0 %v1738_v55  ;;  %v3087_v54 = vld [vmem:[%s3944_s7 + $0x18] sm:$0xff]  }
0x111e   : > { %v1741_v59 = vsel %vm444_vm1, %v3161_v56, 0.0  ;;  %v1981_v10 = vpop.xlane.xlu1 %1980  ;;  %2935 = vmatpush3.bf16.msra.mxu1 %v3087_v54  ;;  %v2181_v54 = vrot.slane %v3676_v61, %v1239_v32  ;;  %v3091_v32 = vld [vmem:[%s3946_s9 + $0x48] sm:$0xff]  }
0x111f   : > { %v1984_v60 = vmul.f32 1.442695, %v1982_v58  ;;  %1742 = vadd.xlane.f32.xlu1 %v1741_v59  ;;  %v1983_v16 = vsub.f32 %v1975_v37, %v1981_v10  ;;  %2948 = vmatprep.subr.bf16.mxu1 %v3257_v1 }
0x1121   : > { %3166 = vpow2.f32 %v1984_v60  ;;  %v1986_v11 = vmul.f32 1.442695, %v1983_v16 }
0x1123   : > { %v3163_v63 = vpop.eup %3162  ;;  %3168 = vpow2.f32 %v1986_v11 }
0x1124   : > { %v1863_v3 = vsel %vm444_vm1, %v3163_v63, 0.0 }
0x1125   : > { %1864 = vadd.xlane.f32.xlu0 %v1863_v3 }
0x1127   : > { %v3165_v5 = vpop.eup %3164 }
0x1128   : > { %v1866_v8 = vsel %vm444_vm1, %v3165_v5, 0.0 }
0x1129   : > { %1867 = vadd.xlane.f32.xlu1 %v1866_v8 }
0x112b   : > { %v3167_v7 = vpop.eup %3166 }
0x112c   : > { %v1988_v9 = vsel %vm444_vm1, %v3167_v7, 0.0 }
0x112d   : > { %1989 = vadd.xlane.f32.xlu0 %v1988_v9  ;;  %v3169_v13 = vpop.eup %3168 }
0x112e   : > { %v1991_v14 = vsel %vm444_vm1, %v3169_v13, 0.0 }
0x113a   : > { %1874 = vrot.lane.b32.xlu1 %v3689_v44, %s3972_s26  ;;  %s3977_s26 = smov 24  }
0x1143   : > { %1749 = vrot.lane.b32.xlu0 %v3689_v44, %s3973_s20 }
0x115e   : > { %1992 = vadd.xlane.f32.xlu1 %v1991_v14 }
0x116f   : > { %1999 = vrot.lane.b32.xlu1 %v3689_v44, %s3974_s29  ;;  %s2528_s29 = scalar_lea.sflag [#allocation3], %s415_s15 }
0x11aa   : > { %v1740_v19 = vpop.xlane.xlu0 %1739 }
0x11ac   : > { %v1743_v53 = vpop.xlane.xlu1 %1742 }
0x11ad   : > { %3170 = vrcp.f32 %v1743_v53 }
0x11ae   : > { %3172 = vrcp.f32 %v1740_v19 }
0x11b2   : > { %v1865_v15 = vpop.xlane.xlu0 %1864 }
0x11b6   : > { %v1868_v17 = vpop.xlane.xlu1 %1867 }
0x11b7   : > { %3174 = vrcp.f32 %v1868_v17  ;;  %v3171_v18 = vpop.eup %3170 }
0x11b8   : > { %3176 = vrcp.f32 %v1865_v15  ;;  %v3173_v21 = vpop.eup %3172  ;;  %v1747_v23 = vmul.f32 %v3171_v18, %v3161_v56 }
0x11b9   : > { %v1746_v24 = vmul.f32 %v3173_v21, %v3159_v52 }
0x11ba   : > { %v1990_v20 = vpop.xlane.xlu0 %1989  ;;  %v1875_v44 = vpop.permute.xlu1 %1874 }
0x11bb   : > { %v1748_v26 = vpack.c.bf16 %v1747_v23, %v1746_v24  ;;  %3178 = vrcp.f32 %v1990_v20 }
0x11be   : > { %v1750_v25 = vpop.permute.xlu0 %1749 }
0x11bf   : > { %2903 = vmatpush3.bf16.msra.mxu0 %v1750_v25 }
0x11c0   : > { %2914 = vmatprep.subr.bf16.mxu0 %v3257_v1 }
0x11c1   : > { %v3175_v27 = vpop.eup %3174 }
0x11c2   : > { %2905 = vmatmul.mubr.msk.bf16.vlgmr.msra.gmra.mrb[32].mxu0 %vm444_vm1, %v1748_v26  ;;  %v3177_v30 = vpop.eup %3176  ;;  %v1872_v31 = vmul.f32 %v3175_v27, %v3165_v5 }
0x11c3   : > { %2915 = vmatpush3.bf16.msra.mxu0 %v1875_v44  ;;  %2916 = vmatprep.mubr.msk.bf16.mxu0 %vm3258_vm0, %v3257_v1  ;;  %v1871_v34 = vmul.f32 %v3177_v30, %v3163_v63 }
0x11c4   : > { %2926 = vmatprep.subr.bf16.mxu0 %v3257_v1 }
0x11c5   : > { %v1873_v35 = vpack.c.bf16 %v1872_v31, %v1871_v34  ;;  %v3179_v0 = vpop.eup %3178 }
0x11c6   : > { %v1996_v38 = vmul.f32 %v3179_v0, %v3167_v7 }
0x11ca   : > { %2917 = vmatmul.mubr.msk.bf16.vlgmr.msra.gmra.mrb[36].mxu0 %vm444_vm1, %v1873_v35 }
0x11cb   : > { %2928 = vmatprep.mubr.msk.bf16.mxu0 %vm3258_vm0, %v3257_v1 }
0x11eb   : > { %v1993_v40 = vpop.xlane.xlu1 %1992 }
0x11ec   : > { %3180 = vrcp.f32 %v1993_v40 }
0x11ef   : > { %v2000_v36 = vpop.permute.xlu1 %1999 }
0x11f0   : > { %2927 = vmatpush3.bf16.msra.mxu0 %v2000_v36 }
0x11f1   : > { %2940 = vmatprep.subr.bf16.mxu0 %v3257_v1 }
0x11f6   : > { %v3181_v37 = vpop.eup %3180 }
0x11f7   : > { %v1997_v39 = vmul.f32 %v3181_v37, %v3169_v13 }
0x11f9   : > { %v1998_v4 = vpack.c.bf16 %v1997_v39, %v1996_v38  ;;  %v3088_v38 = vld [vmem:[%s3945_s8 + $0x10] sm:$0xff]   ;;  %v3089_v39 = vld [vmem:[%s3945_s8 + $0x18] sm:$0xff]  }
0x11fb   : > { %2929 = vmatmul.mubr.msk.bf16.vlgmr.msra.gmra.mrb[40].mxu0 %vm444_vm1, %v1998_v4 }
0x11fc   : > { %2944 = vmatprep.mubr.msk.bf16.mxu0 %vm3258_vm0, %v3257_v1  ;;  %2941 = vmatpush3.bf16.msra.mxu0 %v3088_v38 }
0x11fd   : > { %2942 = vmatprep.subr.bf16.mxu0 %v3257_v1 }
0x1200   : > { %2943 = vmatpush3.bf16.msra.mxu0 %v3089_v39 }
0x1201   : > { %2968 = vmatprep.subr.bf16.mxu0 %v3257_v1 }
0x1295   : > { %v1789_v41 = vpop.f32.mrb[32].mxu0 }
0x1296   : > { %v2906_v42 = vpop.f32.mrb[33].mxu0 }
0x1297   : > { %v1792_v43 = vpop.f32.mrb[34].mxu0 }
0x1298   : > { %v3054_v46 = vpack.i.bf16 %v1792_v43, %v1789_v41  ;;  %v2907_v47 = vpop.f32.mrb[35].mxu0 }
0x129a   : > { %3055 = vrot.lane.b32.xlu1 %v3054_v46, %s3975_s17  ;;  %s2698_s17 = sshll.u32 %s3360_s25, 4 }
0x129b   : > { %s3895_s20 = scalar_lea.hbm %s3949_s12, %s2698_s17 }
0x129d   : > { %v1914_v48 = vpop.f32.mrb[36].mxu0 }
0x129e   : > { %v2918_v49 = vpop.f32.mrb[37].mxu0 }
0x129f   : > { %v1917_v50 = vpop.f32.mrb[38].mxu0 }
0x12a0   : > { %v3059_v52 = vpack.i.bf16 %v1917_v50, %v1914_v48  ;;  %v2919_v12 = vpop.f32.mrb[39].mxu0  ;;  %v2175_v48 = vrot.slane %v3676_v61, %v1233_v28  ;;  %v3090_v28 = vld [vmem:[%s3946_s9 + $0x40] sm:$0xff]  }
0x12a2   : > { %3060 = vrot.lane.b32.xlu0 %v3059_v52, %s3976_s18  ;;  %s416_s18 = scalar_lea.vmem [#allocation2], %s415_s15 }
0x12a3   : > { %s2540_s19 = sshll.u32 %s416_s18, 4  ;;  %s3897_s19 = int_to_ptr.vmem [resolvable:$true] %s2540_s19 }
0x12a4   : > { %s3193_s25 = scalar_lea.vmem %s3897_s19, 16  ;;  %p3200_p0 = scmp.lt.s32.totalorder %s3897_s19, %s3198_s0 }
0x12a5   : > { %p3194_p11 = scmp.ne.s32.totalorder %s3897_s19, %s3193_s25  ;;  %p3201_p1 = scmp.lt.s32.totalorder %s3199_s28, %s3193_s25 }
0x12a7   : > { %p3195_p12 = pnand %p3194_p11, %p3377_p5  ;;  %p3202_p2 = por %p3201_p1, %p3200_p0 }
0x12a9   : > { %p3196_p13 = pneg %p3195_p12 }
0x12ab   : > { %p3203_p3 = pnand %p3202_p2, %p3196_p13 }
0x12ce   : > { %v2039_v55 = vpop.f32.mrb[40].mxu0 }
0x12cf   : > { %v2930_v56 = vpop.f32.mrb[41].mxu0 }
0x12d0   : > { %v2042_v58 = vpop.f32.mrb[42].mxu0 }
0x12d1   : > { %v3064_v59 = vpack.i.bf16 %v2042_v58, %v2039_v55  ;;  %v2931_v60 = vpop.f32.mrb[43].mxu0 }
0x12d2   : > { %v3092_v60 = vld [vmem:[%s3946_s9 + $0x50] sm:$0xff]  }
0x12d3   : > { %3065 = vrot.lane.b32.xlu1 %v3064_v59, %s3977_s26 }
0x130c   : > { %v3056_v63 = vpop.permute.xlu1 %3055 }
0x130d   : > { %v3058_v5 = vunpack.i.h.bf16 %v3056_v63  ;;  %v3057_v8 = vunpack.i.l.bf16 %v3056_v63  ;;  %v3093_v63 = vld [vmem:[%s3946_s9 + $0x58] sm:$0xff]  }
0x130f   : > { %v2071_v16 = vsel %vm602_vm3, %v3740_v2, %v3058_v5  ;;  %v2070_v11 = vsel %vm602_vm3, %v3738_v62, %v3057_v8  ;;  %v2143_v62 = vrot.slane %v3676_v61, %v1201_v57  ;;  %v3095_v5 = vld [vmem:[%s3946_s9 + $0x68] sm:$0xff]   ;;  %v3096_v8 = vld [vmem:[%s3946_s9 + $0x70] sm:$0xff]  }
0x1314   : > { %v3061_v3 = vpop.permute.xlu0 %3060 }
0x1315   : > { %v3063_v7 = vunpack.i.h.bf16 %v3061_v3  ;;  %v3062_v9 = vunpack.i.l.bf16 %v3061_v3  ;;  %v3094_v3 = vld [vmem:[%s3946_s9 + $0x60] sm:$0xff]  }
0x1317   : > { %v2073_v53 = vsel %vm444_vm1, %v2071_v16, %v3063_v7  ;;  %v2072_v19 = vsel %vm444_vm1, %v2070_v11, %v3062_v9  ;;  %v3097_v7 = vld [vmem:[%s3946_s9 + $0x78] sm:$0xff]   ;;  %v2193_v9 = vrot.slane %v3676_v61, %v1250_v51 }
0x1345   : > { %v3066_v10 = vpop.permute.xlu1 %3065 }
0x1346   : > { %v3068_v13 = vunpack.i.h.bf16 %v3066_v10  ;;  %v3067_v14 = vunpack.i.l.bf16 %v3066_v10 }
0x1348   : > { %v2075_v15 = vsel %vm1133_vm4, %v2073_v53, %v3068_v13  ;;  %v2074_v17 = vsel %vm1133_vm4, %v2072_v19, %v3067_v14 }
0x1349   : > { %v2076_v18 = vpack.c.bf16 %v2075_v15, %v2074_v17 }
0x134b   : > { %2937 = vmatmul.mubr.msk.bf16.vlgmr.msra.gmra.mrb[44].mxu1 %vm492_vm2, %v2076_v18 }
0x134c   : > { %2964 = vmatprep.mubr.msk.bf16.mxu1 %vm3258_vm0, %v3257_v1  ;;  %2949 = vmatpush3.bf16.msra.mxu1 %v3090_v28 }
0x134d   : > { %2950 = vmatprep.subr.bf16.mxu1 %v3257_v1 }
0x1350   : > { %2951 = vmatpush3.bf16.msra.mxu1 %v3091_v32 }
0x1351   : > { %2952 = vmatprep.subr.bf16.mxu1 %v3257_v1 }
0x1354   : > { %2953 = vmatpush3.bf16.msra.mxu1 %v3092_v60 }
0x1355   : > { %2954 = vmatprep.subr.bf16.mxu1 %v3257_v1 }
0x1358   : > { %2955 = vmatpush3.bf16.msra.mxu1 %v3093_v63 }
0x1359   : > { %2956 = vmatprep.subr.bf16.mxu1 %v3257_v1 }
0x135c   : > { %2957 = vmatpush3.bf16.msra.mxu1 %v3094_v3 }
0x135d   : > { %2958 = vmatprep.subr.bf16.mxu1 %v3257_v1 }
0x1360   : > { %2959 = vmatpush3.bf16.msra.mxu1 %v3095_v5 }
0x1361   : > { %2960 = vmatprep.subr.bf16.mxu1 %v3257_v1 }
0x1364   : > { %2961 = vmatpush3.bf16.msra.mxu1 %v3096_v8 }
0x1365   : > { %2962 = vmatprep.subr.bf16.mxu1 %v3257_v1 }
0x1368   : > { %2963 = vmatpush3.bf16.msra.mxu1 %v3097_v7 }
0x141e   : > { %v2131_v2 = vpop.f32.mrb[44].mxu1 }
0x141f   : > { %v2138_v20 = vadd.f32 %v2131_v2, %v3652_v29  ;;  %v2938_v21 = vpop.f32.mrb[45].mxu1 }
0x1420   : > { %v2134_v23 = vpop.f32.mrb[46].mxu1 }
0x1421   : > { %v3804_v24 = vadd.f32 %v2143_v62, %v2138_v20  ;;  %v2139_v25 = vadd.f32 %v2134_v23, %v3655_v33  ;;  %v2939_v26 = vpop.f32.mrb[47].mxu1 }
0x1423   : > { %v2146_v27 = vsel %vm492_vm2, %v3804_v24, 0.0  ;;  %v2145_v44 = vadd.f32 %v2143_v62, %v2139_v25 }
0x1424   : > { %2147 = vadd.xlane.f32.xlu0 %v2146_v27 }
0x1425   : > { %v2149_v30 = vsel %vm492_vm2, %v2145_v44, 0.0 }
0x1426   : > { %2150 = vadd.xlane.f32.xlu1 %v2149_v30 }
0x14b1   : > { %v2148_v31 = vpop.xlane.xlu0 %2147 }
0x14b2   : > { %v2152_v57 = vmul.f32 0.03125, %v2148_v31 }
0x14b3   : > { %v2151_v34 = vpop.xlane.xlu1 %2150 }
0x14b4   : > { %v2154_v29 = vsub.f32 %v3804_v24, %v2152_v57  ;;  %v2153_v35 = vmul.f32 0.03125, %v2151_v34 }
0x14b6   : > { %v2155_v40 = vsub.f32 %v2145_v44, %v2153_v35  ;;  %v2156_v36 = vmul.f32 %v2154_v29, %v2154_v29  ;;  %v2378_v35 = vrot.slane %v3676_v61, %v1436_v22  ;;  %v3099_v22 = vld [vmem:[%s3947_s10 + $0x8] sm:$0xff]  }
0x14b8   : > { %v2158_v0 = vsel %vm492_vm2, %v2156_v36, 0.0  ;;  %v2157_v33 = vmul.f32 %v2155_v40, %v2155_v40 }
0x14b9   : > { %2159 = vadd.xlane.f32.xlu0 %v2158_v0 }
0x14ba   : > { %v2161_v37 = vsel %vm492_vm2, %v2157_v33, 0.0 }
0x14bd   : > { %2162 = vadd.xlane.f32.xlu0 %v2161_v37 }
0x1546   : > { %v2160_v4 = vpop.xlane.xlu0 %2159 }
0x1547   : > { %v2164_v41 = vmul.f32 0.03125, %v2160_v4 }
0x1549   : > { %v2166_v42 = vadd.f32 1e-05, %v2164_v41 }
0x154a   : > { %v2163_v43 = vpop.xlane.xlu0 %2162 }
0x154b   : > { %3182 = vrsqrt.f32 %v2166_v42  ;;  %v2165_v45 = vmul.f32 0.03125, %v2163_v43 }
0x154d   : > { %v2167_v46 = vadd.f32 1e-05, %v2165_v45 }
0x154f   : > { %3184 = vrsqrt.f32 %v2167_v46 }
0x1555   : > { %v3183_v47 = vpop.eup %3182 }
0x1556   : > { %v2170_v49 = vmul.f32 %v3183_v47, %v2154_v29  ;;  %v3192_v47 = vld [vmem:[%s3941_s4] sm:$0xff] }
0x1557   : > { %v2481_v7 = vrot.slane %v3192_v47, 4 }
0x1558   : > { %v2176_v52 = vmul.f32 %v2175_v48, %v2170_v49 }
0x1559   : > { %v3185_v50 = vpop.eup %3184 }
0x155a   : > { %v2171_v12 = vmul.f32 %v3185_v50, %v2155_v40  ;;  %v2182_v56 = vadd.f32 %v2181_v54, %v2176_v52  ;;  %v2398_v52 = vrot.slane %v3192_v47, 2 }
0x155c   : > { %v2177_v55 = vmul.f32 %v2175_v48, %v2171_v12  ;;  %v2395_v48 = vrot.slane %v3192_v47, 1 }
0x155e   : > { %v2183_v58 = vadd.f32 %v2181_v54, %v2177_v55 }
0x1560   : > { %v2184_v59 = vpack.c.bf16 %v2183_v58, %v2182_v56  ;;  %v3100_v56 = vld [vmem:[%s3948_s11] sm:$0xff]   ;;  %v3101_v58 = vld [vmem:[%s3948_s11 + $0x8] sm:$0xff]  }
0x1562   : > { %2945 = vmatmul.mubr.msk.bf16.vlgmr.msra.gmra.mrb[44].mxu0 %vm492_vm2, %v2184_v59  ;;  %v2418_v59 = vrot.slane %v3192_v47, 3 }
0x1563   : > { %2972 = vmatprep.mubr.msk.bf16.mxu0 %vm3258_vm0, %v3257_v1  ;;  %2969 = vmatpush3.bf16.msra.mxu0 %v3098_v6 }
0x1564   : > { %2970 = vmatprep.subr.bf16.mxu0 %v3257_v1 }
0x1567   : > { %2971 = vmatpush3.bf16.msra.mxu0 %v3099_v22 }
0x1568   : > { %2976 = vmatprep.subr.bf16.mxu0 %v3257_v1 }
0x1635   : > { %v2243_v10 = vpop.f32.mrb[44].mxu0 }
0x1636   : > { %v2244_v16 = vadd.f32 %v2243_v10, %v2193_v9  ;;  %v2946_v11 = vpop.f32.mrb[45].mxu0 }
0x1637   : > { %v2246_v13 = vpop.f32.mrb[46].mxu0 }
0x1638   : > { %v2250_v14 = vmul.f32 %v2244_v16, %v2244_v16  ;;  %v2247_v53 = vadd.f32 %v2246_v13, %v2193_v9  ;;  %v2947_v19 = vpop.f32.mrb[47].mxu0 }
0x163a   : > { %v2252_v15 = vmul.f32 %v2250_v14, %v2244_v16  ;;  %v2251_v17 = vmul.f32 %v2247_v53, %v2247_v53 }
0x163c   : > { %v2254_v18 = vmul.f32 0.044715, %v2252_v15  ;;  %v2253_v62 = vmul.f32 %v2251_v17, %v2247_v53 }
0x163e   : > { %v2256_v2 = vadd.f32 %v2254_v18, %v2244_v16  ;;  %v2255_v20 = vmul.f32 0.044715, %v2253_v62 }
0x1640   : > { %v2258_v21 = vmul.f32 0.7978846, %v2256_v2  ;;  %v2257_v23 = vadd.f32 %v2255_v20, %v2247_v53 }
0x1642   : > { %3186 = vtanh.f32 %v2258_v21  ;;  %v2259_v25 = vmul.f32 0.7978846, %v2257_v23 }
0x1644   : > { %3188 = vtanh.f32 %v2259_v25 }
0x164c   : > { %v3187_v26 = vpop.eup %3186 }
0x164d   : > { %v2262_v51 = vadd.f32 1.0, %v3187_v26 }
0x164e   : > { %v3189_v27 = vpop.eup %3188 }
0x164f   : > { %v2264_v44 = vmul.f32 0.5, %v2262_v51  ;;  %v2263_v30 = vadd.f32 1.0, %v3189_v27 }
0x1651   : > { %v2265_v31 = vmul.f32 0.5, %v2263_v30  ;;  %v2266_v57 = vmul.f32 %v2264_v44, %v2244_v16 }
0x1653   : > { %v2267_v34 = vmul.f32 %v2265_v31, %v2247_v53 }
0x1655   : > { %v2268_v29 = vpack.c.bf16 %v2267_v34, %v2266_v57 }
0x1657   : > { %2965 = vmatmul.mubr.bf16.vlgmr.msra.gmra.mrb[48].mxu1 %v2268_v29 }
0x172a   : > { %v2368_v40 = vpop.f32.mrb[48].mxu1 }
0x172b   : > { %v2374_v36 = vadd.f32 %v2368_v40, %v3804_v24  ;;  %v2966_v0 = vpop.f32.mrb[49].mxu1 }
0x172c   : > { %v2371_v33 = vpop.f32.mrb[50].mxu1 }
0x172d   : > { %v2967_v37 = vpop.f32.mrb[51].mxu1  ;;  %v2379_v38 = vadd.f32 %v2378_v35, %v2374_v36 }
0x172f   : > { %v2381_v39 = vsel %vm2380_vm5, %v2379_v38, 0.0 }
0x1730   : > { %2382 = vadd.xlane.f32.xlu0 %v2381_v39 }
0x17bd   : > { %v2383_v4 = vpop.xlane.xlu0 %2382 }
0x17be   : > { %v2384_v41 = vmul.f32 0.03125, %v2383_v4 }
0x17c0   : > { %v2385_v42 = vsub.f32 %v2379_v38, %v2384_v41 }
0x17c2   : > { %v2386_v43 = vmul.f32 %v2385_v42, %v2385_v42 }
0x17c4   : > { %v2387_v45 = vsel %vm2380_vm5, %v2386_v43, 0.0 }
0x17c5   : > { %2388 = vadd.xlane.f32.xlu1 %v2387_v45 }
0x1852   : > { %v2389_v61 = vpop.xlane.xlu1 %2388 }
0x1853   : > { %v2390_v24 = vmul.f32 0.03125, %v2389_v61 }
0x1855   : > { %v2391_v46 = vadd.f32 1e-05, %v2390_v24 }
0x1857   : > { %3190 = vrsqrt.f32 %v2391_v46 }
0x1861   : > { %v3191_v49 = vpop.eup %3190 }
0x1862   : > { %v2393_v50 = vmul.f32 %v3191_v49, %v2385_v42 }
0x1864   : > { %v2397_v12 = vmul.f32 %v2395_v48, %v2393_v50 }
0x1866   : > { %v2400_v54 = vadd.f32 %v2398_v52, %v2397_v12 }
0x1868   : > { %v2401_v55 = vpack.c.bf16 %v2400_v54, %v2400_v54 }
0x186a   : > { %2973 = vmatmul.mubr.msk.bf16.vlgmr.msra.gmra.mrb[48].mxu0 %vm492_vm2, %v2401_v55 }
0x186b   : > { %2980 = vmatprep.mubr.msk.bf16.mxu0 %vm3258_vm0, %v3257_v1  ;;  %2977 = vmatpush3.bf16.msra.mxu0 %v3100_v56 }
0x186c   : > { %2978 = vmatprep.subr.bf16.mxu0 %v3257_v1 }
0x186f   : > { %2979 = vmatpush3.bf16.msra.mxu0 %v3101_v58 }
0x193d   : > { %v2457_v28 = vpop.f32.mrb[48].mxu0 }
0x193e   : > { %v2458_v32 = vadd.f32 %v2457_v28, %v2418_v59  ;;  %v2974_v60 = vpop.f32.mrb[49].mxu0 }
0x193f   : > { %v2460_v63 = vpop.f32.mrb[50].mxu0 }
0x1940   : > { %v2463_v3 = vmax.f32 %v2458_v32, 0.0  ;;  %v2975_v5 = vpop.f32.mrb[51].mxu0 }
0x1942   : > { %v2464_v8 = vpack.c.bf16 %v2463_v3, %v2463_v3 }
0x1944   : > { %2981 = vmatmul.mubr.msk.bf16.vlgmr.msra.gmra.mrb[52].mxu0 %vm492_vm2, %v2464_v8 }
0x1a17   : > { %v2520_v1 = vpop.f32.mrb[52].mxu0 }
0x1a18   : > { %v2521_v9 = vadd.f32 %v2520_v1, %v2481_v7  ;;  %v2982_v10 = vpop.f32.mrb[53].mxu0 }
0x1a19   : > { %v2523_v16 = vpop.f32.mrb[54].mxu0 }
0x1a1a   : > { %2526 = vst [vmem:[%s416_s18] sm:$0x1] %v2521_v9  ;;  %v2983_v11 = vpop.f32.mrb[55].mxu0 }
0x1a1b   : > { %3206 = shalt.err (!%p3203_p3)
}
0x1a1c   : > { %s3207_s15 = scalar_lea.hbm %s3895_s20, 16  ;;  %s3211_s26 = scalar_lea.hbm %s3949_s12, 32 }
0x1a1d   : > { %p3208_p4 = scmp.ne.s32.totalorder %s3895_s20, %s3207_s15  ;;  %p3212_p9 = scmp.lt.u32.totalorder %s3895_s20, %s3949_s12 }
0x1a1e   : > { %p3213_p10 = scmp.lt.u32.totalorder %s3211_s26, %s3207_s15  ;;  %p3215_p12 = scmp.lt.u32.totalorder %s3207_s15, %s3895_s20 }
0x1a1f   : > { %p3209_p7 = pnand %p3208_p4, %p3377_p5 }
0x1a20   : > { %p3214_p11 = por %p3213_p10, %p3212_p9 }
0x1a21   : > { %p3210_p8 = pneg %p3209_p7 }
0x1a22   : > { %p3216_p13 = por %p3215_p12, %p3214_p11 }
0x1a24   : > { %p3217_p0 = pnand %p3216_p13, %p3210_p8 }
0x1a26   : > { %3220 = shalt.err (!%p3217_p0)
}
0x1a27   : > { %2984 = dma.vmem_to_hbm [thread:$0]  (%p3377_p5), %s3897_s19, 16, %s3895_s20, %s2528_s29  }
0x1a28 PF: > { %p2990_p1 = scmp.ge.s32.totalorder %s3255_s24, 2  ;;  %s2552_s25 = sand.u32 1, %s3243_s21  }
0x1a29   : > { %s2553_s28 = scalar_lea.sflag [#allocation3], %s2552_s25 }
0x1a2a   : > { %p2987_p2 = pnand %p2990_p1, %p3381_p6 }
0x1a2c   : > { %3238 = dma.done.wait (!%p2987_p2), %s2553_s28, 16  }
0x1a2d   : > { %3240 = vsyncadd (!%p2987_p2), %s2553_s28, 4294967280  ;;  %p22_p3 = scmp.ge.s32.totalorder %s3364_s27, 4   ;;  %s3978_s21 = smov %s3247_s22 }
0x1a2e   : > { %s3979_s22 = smov %s3251_s23  ;;  %s3980_s23 = smov %s3375_s30 }
0x1a2f   : > { %s3981_s24 = smov %s3364_s27  ;;  %24 = sbr.rel (!%p22_p3) target bundleno = 5 (0x5), region = 111 }
0x1a36   :  { %2557 = vsyncpa [#allocation3], 1 }
0x1a37   :  { %2559 = vsyncpa [#allocation3 + $0x1], 1 }

</bundles_post_ra>
